<compile_context>
chip_gen: v6e
topology: v6e:2x2x1
jax: 0.10.0
libtpu: 0.0.40
codegen_flags: <defaults>
</compile_context>

<pallas_src>
import functools

import jax
import jax.numpy as jnp
from jax import lax
from jax.experimental import pallas as pl
from jax.experimental.pallas import tpu as pltpu

EPS = 1e-5


def bn_relu_kernel(x_ref, gamma_ref, beta_ref, o_ref, *, chunk, inv_n):
    # x_ref / o_ref: (CR, L)  — channels on sublanes, N*H*W on lanes.
    # gamma_ref / beta_ref: (CR, 1) sublane vectors (lane-broadcast for free).
    cr = x_ref.shape[0]
    n_chunks = cr // chunk

    def body(i, carry):
        r0 = pl.multiple_of(i * chunk, chunk)
        rows = pl.ds(r0, chunk)

        x = x_ref[rows, :].astype(jnp.float32)                    # (chunk, L)
        # Per-channel mean: lane reduction (XLU); the logical lane extent is L,
        # so padded lanes (L=196 -> 256) are masked out of the sum.
        mean = jnp.sum(x, axis=-1, keepdims=True) * inv_n          # (chunk, 1)
        xc = x - mean
        # Centered variance: numerically safe (>= 0 by construction).
        var = jnp.sum(xc * xc, axis=-1, keepdims=True) * inv_n     # (chunk, 1)
        inv_std = lax.rsqrt(var + EPS)                             # EUP slot

        g = gamma_ref[rows, :].astype(jnp.float32)                 # (chunk, 1)
        b = beta_ref[rows, :].astype(jnp.float32)                  # (chunk, 1)
        y = xc * (g * inv_std) + b
        o_ref[rows, :] = jnp.maximum(y, 0.0).astype(o_ref.dtype)
        return carry

    lax.fori_loop(0, n_chunks, body, 0, unroll=True)


def batchnorm_relu(x_nchw, gamma, beta, *, cr=None, chunk=None):
    N, C, H, W = x_nchw.shape
    L = N * H * W

    # Transpose-free path: for N == 1, NCHW is already (C, H*W) contiguous.
    if N == 1:
        x_cl = x_nchw.reshape(C, L)
    else:
        # TODO(synk): N > 1 re-introduces a transpose (stats are per-channel
        # across the batch); run the surrounding model NHWC to avoid it.
        x_cl = jnp.transpose(x_nchw, (1, 0, 2, 3)).reshape(C, L)

    if cr is None:
        cr = C  # single grid step: fixed overhead dominates at this size
    assert C % cr == 0 and cr % 8 == 0, "channel-row block must be sublane-aligned"
    if chunk is None:
        chunk = next(c for c in (32, 16, 8) if cr % c == 0)
    assert cr % chunk == 0

    gamma2 = gamma.reshape(C, 1).astype(jnp.float32)
    beta2 = beta.reshape(C, 1).astype(jnp.float32)

    itemsize = jnp.dtype(x_nchw.dtype).itemsize
    kernel = functools.partial(bn_relu_kernel, chunk=chunk, inv_n=1.0 / L)

    out_cl = pl.pallas_call(
        kernel,
        out_shape=jax.ShapeDtypeStruct((C, L), x_nchw.dtype),
        grid_spec=pltpu.PrefetchScalarGridSpec(
            num_scalar_prefetch=0,
            grid=(C // cr,),
            in_specs=[
                pl.BlockSpec((cr, L), lambda i: (i, 0)),
                pl.BlockSpec((cr, 1), lambda i: (i, 0)),
                pl.BlockSpec((cr, 1), lambda i: (i, 0)),
            ],
            out_specs=pl.BlockSpec((cr, L), lambda i: (i, 0)),
        ),
        compiler_params=pltpu.CompilerParams(
            dimension_semantics=("parallel",),
        ),
        cost_estimate=pl.CostEstimate(
            flops=7 * C * L,
            transcendentals=C,
            bytes_accessed=2 * C * L * itemsize + 2 * C * 4,
        ),
    )(x_cl, gamma2, beta2)

    if N == 1:
        return out_cl.reshape(N, C, H, W)   # (C, H*W) -> (1, C, H, W) is free
    return out_cl.reshape(C, N, H, W).transpose(1, 0, 2, 3)


if __name__ == "__main__":
    # Shape from the reference module: x122 = randn(1, 256, 14, 14).
    N, C, H, W = 1, 256, 14, 14
    key = jax.random.PRNGKey(0)
    kx, kg, kb = jax.random.split(key, 3)
    # Shift activations off zero mean to exercise the centered-variance path
    # (the regime where E[x^2]-E[x]^2 would cancel catastrophically).
    x = 3.0 + jax.random.normal(kx, (N, C, H, W), dtype=jnp.float32)
    gamma = 1.0 + 0.1 * jax.random.normal(kg, (C,), dtype=jnp.float32)
    beta = 0.1 * jax.random.normal(kb, (C,), dtype=jnp.float32)

    fused = jax.jit(batchnorm_relu)
    out = jax.block_until_ready(fused(x, gamma, beta))

    # Pure-JAX reference: training-mode BN (biased batch variance) + ReLU.
    mean = jnp.mean(x, axis=(0, 2, 3), keepdims=True)
    var = jnp.mean((x - mean) ** 2, axis=(0, 2, 3), keepdims=True)
    xhat = (x - mean) / jnp.sqrt(var + EPS)
    ref = jnp.maximum(xhat * gamma.reshape(1, C, 1, 1) + beta.reshape(1, C, 1, 1), 0.0)

    assert out.shape == (N, C, H, W)
    err = float(jnp.max(jnp.abs(out - ref)))
    assert err < 1e-4, f"max abs err {err}"
    print("KERNEL_OK")
</pallas_src>

<mosaic_0001>
module attributes {stable_mosaic.version = 11 : i64} {
  func.func @bn_relu_kernel(%arg0: i32, %arg1: memref<256x196xf32, #tpu.memory_space<vmem>>, %arg2: memref<256x1xf32, #tpu.memory_space<vmem>>, %arg3: memref<256x1xf32, #tpu.memory_space<vmem>>, %arg4: memref<256x196xf32, #tpu.memory_space<vmem>>) attributes {dimension_semantics = [#tpu.dimension_semantics<parallel>], iteration_bounds = array<i64: 1>, scalar_prefetch = 0 : i64, scratch_operands = 0 : i64, tpu.core_type = #tpu.core_type<tc>, window_params = [{transform_indices = @transform_0, window_bounds = array<i64: 256, 196>}, {transform_indices = @transform_1, window_bounds = array<i64: 256, 1>}, {transform_indices = @transform_2, window_bounds = array<i64: 256, 1>}, {transform_indices = @transform_3, window_bounds = array<i64: 256, 196>}]} {
    %c0_i32 = arith.constant 0 : i32
    %c32_i32 = arith.constant 32 : i32
    %0 = arith.muli %c0_i32, %c32_i32 : i32
    %1 = tpu.assume_multiple %0, 32 : i32
    %2 = arith.index_cast %1 : i32 to index
    %c0 = arith.constant 0 : index
    %3 = vector.load %arg1[%2, %c0] : memref<256x196xf32, #tpu.memory_space<vmem>>, vector<32x196xf32>
    %cst = arith.constant dense<0.000000e+00> : vector<32xf32>
    %4 = vector.multi_reduction <add>, %3, %cst [1] : vector<32x196xf32> to vector<32xf32>
    %5 = vector.shape_cast %4 : vector<32xf32> to vector<32x1xf32>
    %cst_0 = arith.constant 0.00510204071 : f32
    %6 = vector.broadcast %cst_0 : f32 to vector<32x1xf32>
    %7 = arith.mulf %5, %6 : vector<32x1xf32>
    %8 = vector.broadcast %7 : vector<32x1xf32> to vector<32x196xf32>
    %9 = arith.subf %3, %8 : vector<32x196xf32>
    %10 = arith.mulf %9, %9 : vector<32x196xf32>
    %cst_1 = arith.constant dense<0.000000e+00> : vector<32xf32>
    %11 = vector.multi_reduction <add>, %10, %cst_1 [1] : vector<32x196xf32> to vector<32xf32>
    %12 = vector.shape_cast %11 : vector<32xf32> to vector<32x1xf32>
    %cst_2 = arith.constant 0.00510204071 : f32
    %13 = vector.broadcast %cst_2 : f32 to vector<32x1xf32>
    %14 = arith.mulf %12, %13 : vector<32x1xf32>
    %cst_3 = arith.constant 9.99999974E-6 : f32
    %15 = vector.broadcast %cst_3 : f32 to vector<32x1xf32>
    %16 = arith.addf %14, %15 : vector<32x1xf32>
    %17 = math.rsqrt %16 : vector<32x1xf32>
    %18 = arith.index_cast %1 : i32 to index
    %c0_4 = arith.constant 0 : index
    %19 = vector.load %arg2[%18, %c0_4] : memref<256x1xf32, #tpu.memory_space<vmem>>, vector<32x1xf32>
    %20 = arith.index_cast %1 : i32 to index
    %c0_5 = arith.constant 0 : index
    %21 = vector.load %arg3[%20, %c0_5] : memref<256x1xf32, #tpu.memory_space<vmem>>, vector<32x1xf32>
    %22 = arith.mulf %19, %17 : vector<32x1xf32>
    %23 = vector.broadcast %22 : vector<32x1xf32> to vector<32x196xf32>
    %24 = arith.mulf %9, %23 : vector<32x196xf32>
    %25 = vector.broadcast %21 : vector<32x1xf32> to vector<32x196xf32>
    %26 = arith.addf %24, %25 : vector<32x196xf32>
    %cst_6 = arith.constant 0.000000e+00 : f32
    %27 = vector.broadcast %cst_6 : f32 to vector<32x196xf32>
    %28 = arith.maximumf %26, %27 : vector<32x196xf32>
    %29 = arith.index_cast %1 : i32 to index
    %c0_7 = arith.constant 0 : index
    %30 = vector.load %arg4[%29, %c0_7] : memref<256x196xf32, #tpu.memory_space<vmem>>, vector<32x196xf32>
    tpu.vector_store %arg4[%29, %c0_7], %28 {strides = array<i32>} : memref<256x196xf32, #tpu.memory_space<vmem>>, vector<32x196xf32>,
    %c1_i32 = arith.constant 1 : i32
    %c32_i32_8 = arith.constant 32 : i32
    %31 = arith.muli %c1_i32, %c32_i32_8 : i32
    %32 = tpu.assume_multiple %31, 32 : i32
    %33 = arith.index_cast %32 : i32 to index
    %c0_9 = arith.constant 0 : index
    %34 = vector.load %arg1[%33, %c0_9] : memref<256x196xf32, #tpu.memory_space<vmem>>, vector<32x196xf32>
    %cst_10 = arith.constant dense<0.000000e+00> : vector<32xf32>
    %35 = vector.multi_reduction <add>, %34, %cst_10 [1] : vector<32x196xf32> to vector<32xf32>
    %36 = vector.shape_cast %35 : vector<32xf32> to vector<32x1xf32>
    %cst_11 = arith.constant 0.00510204071 : f32
    %37 = vector.broadcast %cst_11 : f32 to vector<32x1xf32>
    %38 = arith.mulf %36, %37 : vector<32x1xf32>
    %39 = vector.broadcast %38 : vector<32x1xf32> to vector<32x196xf32>
    %40 = arith.subf %34, %39 : vector<32x196xf32>
    %41 = arith.mulf %40, %40 : vector<32x196xf32>
    %cst_12 = arith.constant dense<0.000000e+00> : vector<32xf32>
    %42 = vector.multi_reduction <add>, %41, %cst_12 [1] : vector<32x196xf32> to vector<32xf32>
    %43 = vector.shape_cast %42 : vector<32xf32> to vector<32x1xf32>
    %cst_13 = arith.constant 0.00510204071 : f32
    %44 = vector.broadcast %cst_13 : f32 to vector<32x1xf32>
    %45 = arith.mulf %43, %44 : vector<32x1xf32>
    %cst_14 = arith.constant 9.99999974E-6 : f32
    %46 = vector.broadcast %cst_14 : f32 to vector<32x1xf32>
    %47 = arith.addf %45, %46 : vector<32x1xf32>
    %48 = math.rsqrt %47 : vector<32x1xf32>
    %49 = arith.index_cast %32 : i32 to index
    %c0_15 = arith.constant 0 : index
    %50 = vector.load %arg2[%49, %c0_15] : memref<256x1xf32, #tpu.memory_space<vmem>>, vector<32x1xf32>
    %51 = arith.index_cast %32 : i32 to index
    %c0_16 = arith.constant 0 : index
    %52 = vector.load %arg3[%51, %c0_16] : memref<256x1xf32, #tpu.memory_space<vmem>>, vector<32x1xf32>
    %53 = arith.mulf %50, %48 : vector<32x1xf32>
    %54 = vector.broadcast %53 : vector<32x1xf32> to vector<32x196xf32>
    %55 = arith.mulf %40, %54 : vector<32x196xf32>
    %56 = vector.broadcast %52 : vector<32x1xf32> to vector<32x196xf32>
    %57 = arith.addf %55, %56 : vector<32x196xf32>
    %cst_17 = arith.constant 0.000000e+00 : f32
    %58 = vector.broadcast %cst_17 : f32 to vector<32x196xf32>
    %59 = arith.maximumf %57, %58 : vector<32x196xf32>
    %60 = arith.index_cast %32 : i32 to index
    %c0_18 = arith.constant 0 : index
    %61 = vector.load %arg4[%60, %c0_18] : memref<256x196xf32, #tpu.memory_space<vmem>>, vector<32x196xf32>
    tpu.vector_store %arg4[%60, %c0_18], %59 {strides = array<i32>} : memref<256x196xf32, #tpu.memory_space<vmem>>, vector<32x196xf32>,
    %c2_i32 = arith.constant 2 : i32
    %c32_i32_19 = arith.constant 32 : i32
    %62 = arith.muli %c2_i32, %c32_i32_19 : i32
    %63 = tpu.assume_multiple %62, 32 : i32
    %64 = arith.index_cast %63 : i32 to index
    %c0_20 = arith.constant 0 : index
    %65 = vector.load %arg1[%64, %c0_20] : memref<256x196xf32, #tpu.memory_space<vmem>>, vector<32x196xf32>
    %cst_21 = arith.constant dense<0.000000e+00> : vector<32xf32>
    %66 = vector.multi_reduction <add>, %65, %cst_21 [1] : vector<32x196xf32> to vector<32xf32>
    %67 = vector.shape_cast %66 : vector<32xf32> to vector<32x1xf32>
    %cst_22 = arith.constant 0.00510204071 : f32
    %68 = vector.broadcast %cst_22 : f32 to vector<32x1xf32>
    %69 = arith.mulf %67, %68 : vector<32x1xf32>
    %70 = vector.broadcast %69 : vector<32x1xf32> to vector<32x196xf32>
    %71 = arith.subf %65, %70 : vector<32x196xf32>
    %72 = arith.mulf %71, %71 : vector<32x196xf32>
    %cst_23 = arith.constant dense<0.000000e+00> : vector<32xf32>
    %73 = vector.multi_reduction <add>, %72, %cst_23 [1] : vector<32x196xf32> to vector<32xf32>
    %74 = vector.shape_cast %73 : vector<32xf32> to vector<32x1xf32>
    %cst_24 = arith.constant 0.00510204071 : f32
    %75 = vector.broadcast %cst_24 : f32 to vector<32x1xf32>
    %76 = arith.mulf %74, %75 : vector<32x1xf32>
    %cst_25 = arith.constant 9.99999974E-6 : f32
    %77 = vector.broadcast %cst_25 : f32 to vector<32x1xf32>
    %78 = arith.addf %76, %77 : vector<32x1xf32>
    %79 = math.rsqrt %78 : vector<32x1xf32>
    %80 = arith.index_cast %63 : i32 to index
    %c0_26 = arith.constant 0 : index
    %81 = vector.load %arg2[%80, %c0_26] : memref<256x1xf32, #tpu.memory_space<vmem>>, vector<32x1xf32>
    %82 = arith.index_cast %63 : i32 to index
    %c0_27 = arith.constant 0 : index
    %83 = vector.load %arg3[%82, %c0_27] : memref<256x1xf32, #tpu.memory_space<vmem>>, vector<32x1xf32>
    %84 = arith.mulf %81, %79 : vector<32x1xf32>
    %85 = vector.broadcast %84 : vector<32x1xf32> to vector<32x196xf32>
    %86 = arith.mulf %71, %85 : vector<32x196xf32>
    %87 = vector.broadcast %83 : vector<32x1xf32> to vector<32x196xf32>
    %88 = arith.addf %86, %87 : vector<32x196xf32>
    %cst_28 = arith.constant 0.000000e+00 : f32
    %89 = vector.broadcast %cst_28 : f32 to vector<32x196xf32>
    %90 = arith.maximumf %88, %89 : vector<32x196xf32>
    %91 = arith.index_cast %63 : i32 to index
    %c0_29 = arith.constant 0 : index
    %92 = vector.load %arg4[%91, %c0_29] : memref<256x196xf32, #tpu.memory_space<vmem>>, vector<32x196xf32>
    tpu.vector_store %arg4[%91, %c0_29], %90 {strides = array<i32>} : memref<256x196xf32, #tpu.memory_space<vmem>>, vector<32x196xf32>,
    %c3_i32 = arith.constant 3 : i32
    %c32_i32_30 = arith.constant 32 : i32
    %93 = arith.muli %c3_i32, %c32_i32_30 : i32
    %94 = tpu.assume_multiple %93, 32 : i32
    %95 = arith.index_cast %94 : i32 to index
    %c0_31 = arith.constant 0 : index
    %96 = vector.load %arg1[%95, %c0_31] : memref<256x196xf32, #tpu.memory_space<vmem>>, vector<32x196xf32>
    %cst_32 = arith.constant dense<0.000000e+00> : vector<32xf32>
    %97 = vector.multi_reduction <add>, %96, %cst_32 [1] : vector<32x196xf32> to vector<32xf32>
    %98 = vector.shape_cast %97 : vector<32xf32> to vector<32x1xf32>
    %cst_33 = arith.constant 0.00510204071 : f32
    %99 = vector.broadcast %cst_33 : f32 to vector<32x1xf32>
    %100 = arith.mulf %98, %99 : vector<32x1xf32>
    %101 = vector.broadcast %100 : vector<32x1xf32> to vector<32x196xf32>
    %102 = arith.subf %96, %101 : vector<32x196xf32>
    %103 = arith.mulf %102, %102 : vector<32x196xf32>
    %cst_34 = arith.constant dense<0.000000e+00> : vector<32xf32>
    %104 = vector.multi_reduction <add>, %103, %cst_34 [1] : vector<32x196xf32> to vector<32xf32>
    %105 = vector.shape_cast %104 : vector<32xf32> to vector<32x1xf32>
    %cst_35 = arith.constant 0.00510204071 : f32
    %106 = vector.broadcast %cst_35 : f32 to vector<32x1xf32>
    %107 = arith.mulf %105, %106 : vector<32x1xf32>
    %cst_36 = arith.constant 9.99999974E-6 : f32
    %108 = vector.broadcast %cst_36 : f32 to vector<32x1xf32>
    %109 = arith.addf %107, %108 : vector<32x1xf32>
    %110 = math.rsqrt %109 : vector<32x1xf32>
    %111 = arith.index_cast %94 : i32 to index
    %c0_37 = arith.constant 0 : index
    %112 = vector.load %arg2[%111, %c0_37] : memref<256x1xf32, #tpu.memory_space<vmem>>, vector<32x1xf32>
    %113 = arith.index_cast %94 : i32 to index
    %c0_38 = arith.constant 0 : index
    %114 = vector.load %arg3[%113, %c0_38] : memref<256x1xf32, #tpu.memory_space<vmem>>, vector<32x1xf32>
    %115 = arith.mulf %112, %110 : vector<32x1xf32>
    %116 = vector.broadcast %115 : vector<32x1xf32> to vector<32x196xf32>
    %117 = arith.mulf %102, %116 : vector<32x196xf32>
    %118 = vector.broadcast %114 : vector<32x1xf32> to vector<32x196xf32>
    %119 = arith.addf %117, %118 : vector<32x196xf32>
    %cst_39 = arith.constant 0.000000e+00 : f32
    %120 = vector.broadcast %cst_39 : f32 to vector<32x196xf32>
    %121 = arith.maximumf %119, %120 : vector<32x196xf32>
    %122 = arith.index_cast %94 : i32 to index
    %c0_40 = arith.constant 0 : index
    %123 = vector.load %arg4[%122, %c0_40] : memref<256x196xf32, #tpu.memory_space<vmem>>, vector<32x196xf32>
    tpu.vector_store %arg4[%122, %c0_40], %121 {strides = array<i32>} : memref<256x196xf32, #tpu.memory_space<vmem>>, vector<32x196xf32>,
    %c4_i32 = arith.constant 4 : i32
    %c32_i32_41 = arith.constant 32 : i32
    %124 = arith.muli %c4_i32, %c32_i32_41 : i32
    %125 = tpu.assume_multiple %124, 32 : i32
    %126 = arith.index_cast %125 : i32 to index
    %c0_42 = arith.constant 0 : index
    %127 = vector.load %arg1[%126, %c0_42] : memref<256x196xf32, #tpu.memory_space<vmem>>, vector<32x196xf32>
    %cst_43 = arith.constant dense<0.000000e+00> : vector<32xf32>
    %128 = vector.multi_reduction <add>, %127, %cst_43 [1] : vector<32x196xf32> to vector<32xf32>
    %129 = vector.shape_cast %128 : vector<32xf32> to vector<32x1xf32>
    %cst_44 = arith.constant 0.00510204071 : f32
    %130 = vector.broadcast %cst_44 : f32 to vector<32x1xf32>
    %131 = arith.mulf %129, %130 : vector<32x1xf32>
    %132 = vector.broadcast %131 : vector<32x1xf32> to vector<32x196xf32>
    %133 = arith.subf %127, %132 : vector<32x196xf32>
    %134 = arith.mulf %133, %133 : vector<32x196xf32>
    %cst_45 = arith.constant dense<0.000000e+00> : vector<32xf32>
    %135 = vector.multi_reduction <add>, %134, %cst_45 [1] : vector<32x196xf32> to vector<32xf32>
    %136 = vector.shape_cast %135 : vector<32xf32> to vector<32x1xf32>
    %cst_46 = arith.constant 0.00510204071 : f32
    %137 = vector.broadcast %cst_46 : f32 to vector<32x1xf32>
    %138 = arith.mulf %136, %137 : vector<32x1xf32>
    %cst_47 = arith.constant 9.99999974E-6 : f32
    %139 = vector.broadcast %cst_47 : f32 to vector<32x1xf32>
    %140 = arith.addf %138, %139 : vector<32x1xf32>
    %141 = math.rsqrt %140 : vector<32x1xf32>
    %142 = arith.index_cast %125 : i32 to index
    %c0_48 = arith.constant 0 : index
    %143 = vector.load %arg2[%142, %c0_48] : memref<256x1xf32, #tpu.memory_space<vmem>>, vector<32x1xf32>
    %144 = arith.index_cast %125 : i32 to index
    %c0_49 = arith.constant 0 : index
    %145 = vector.load %arg3[%144, %c0_49] : memref<256x1xf32, #tpu.memory_space<vmem>>, vector<32x1xf32>
    %146 = arith.mulf %143, %141 : vector<32x1xf32>
    %147 = vector.broadcast %146 : vector<32x1xf32> to vector<32x196xf32>
    %148 = arith.mulf %133, %147 : vector<32x196xf32>
    %149 = vector.broadcast %145 : vector<32x1xf32> to vector<32x196xf32>
    %150 = arith.addf %148, %149 : vector<32x196xf32>
    %cst_50 = arith.constant 0.000000e+00 : f32
    %151 = vector.broadcast %cst_50 : f32 to vector<32x196xf32>
    %152 = arith.maximumf %150, %151 : vector<32x196xf32>
    %153 = arith.index_cast %125 : i32 to index
    %c0_51 = arith.constant 0 : index
    %154 = vector.load %arg4[%153, %c0_51] : memref<256x196xf32, #tpu.memory_space<vmem>>, vector<32x196xf32>
    tpu.vector_store %arg4[%153, %c0_51], %152 {strides = array<i32>} : memref<256x196xf32, #tpu.memory_space<vmem>>, vector<32x196xf32>,
    %c5_i32 = arith.constant 5 : i32
    %c32_i32_52 = arith.constant 32 : i32
    %155 = arith.muli %c5_i32, %c32_i32_52 : i32
    %156 = tpu.assume_multiple %155, 32 : i32
    %157 = arith.index_cast %156 : i32 to index
    %c0_53 = arith.constant 0 : index
    %158 = vector.load %arg1[%157, %c0_53] : memref<256x196xf32, #tpu.memory_space<vmem>>, vector<32x196xf32>
    %cst_54 = arith.constant dense<0.000000e+00> : vector<32xf32>
    %159 = vector.multi_reduction <add>, %158, %cst_54 [1] : vector<32x196xf32> to vector<32xf32>
    %160 = vector.shape_cast %159 : vector<32xf32> to vector<32x1xf32>
    %cst_55 = arith.constant 0.00510204071 : f32
    %161 = vector.broadcast %cst_55 : f32 to vector<32x1xf32>
    %162 = arith.mulf %160, %161 : vector<32x1xf32>
    %163 = vector.broadcast %162 : vector<32x1xf32> to vector<32x196xf32>
    %164 = arith.subf %158, %163 : vector<32x196xf32>
    %165 = arith.mulf %164, %164 : vector<32x196xf32>
    %cst_56 = arith.constant dense<0.000000e+00> : vector<32xf32>
    %166 = vector.multi_reduction <add>, %165, %cst_56 [1] : vector<32x196xf32> to vector<32xf32>
    %167 = vector.shape_cast %166 : vector<32xf32> to vector<32x1xf32>
    %cst_57 = arith.constant 0.00510204071 : f32
    %168 = vector.broadcast %cst_57 : f32 to vector<32x1xf32>
    %169 = arith.mulf %167, %168 : vector<32x1xf32>
    %cst_58 = arith.constant 9.99999974E-6 : f32
    %170 = vector.broadcast %cst_58 : f32 to vector<32x1xf32>
    %171 = arith.addf %169, %170 : vector<32x1xf32>
    %172 = math.rsqrt %171 : vector<32x1xf32>
    %173 = arith.index_cast %156 : i32 to index
    %c0_59 = arith.constant 0 : index
    %174 = vector.load %arg2[%173, %c0_59] : memref<256x1xf32, #tpu.memory_space<vmem>>, vector<32x1xf32>
    %175 = arith.index_cast %156 : i32 to index
    %c0_60 = arith.constant 0 : index
    %176 = vector.load %arg3[%175, %c0_60] : memref<256x1xf32, #tpu.memory_space<vmem>>, vector<32x1xf32>
    %177 = arith.mulf %174, %172 : vector<32x1xf32>
    %178 = vector.broadcast %177 : vector<32x1xf32> to vector<32x196xf32>
    %179 = arith.mulf %164, %178 : vector<32x196xf32>
    %180 = vector.broadcast %176 : vector<32x1xf32> to vector<32x196xf32>
    %181 = arith.addf %179, %180 : vector<32x196xf32>
    %cst_61 = arith.constant 0.000000e+00 : f32
    %182 = vector.broadcast %cst_61 : f32 to vector<32x196xf32>
    %183 = arith.maximumf %181, %182 : vector<32x196xf32>
    %184 = arith.index_cast %156 : i32 to index
    %c0_62 = arith.constant 0 : index
    %185 = vector.load %arg4[%184, %c0_62] : memref<256x196xf32, #tpu.memory_space<vmem>>, vector<32x196xf32>
    tpu.vector_store %arg4[%184, %c0_62], %183 {strides = array<i32>} : memref<256x196xf32, #tpu.memory_space<vmem>>, vector<32x196xf32>,
    %c6_i32 = arith.constant 6 : i32
    %c32_i32_63 = arith.constant 32 : i32
    %186 = arith.muli %c6_i32, %c32_i32_63 : i32
    %187 = tpu.assume_multiple %186, 32 : i32
    %188 = arith.index_cast %187 : i32 to index
    %c0_64 = arith.constant 0 : index
    %189 = vector.load %arg1[%188, %c0_64] : memref<256x196xf32, #tpu.memory_space<vmem>>, vector<32x196xf32>
    %cst_65 = arith.constant dense<0.000000e+00> : vector<32xf32>
    %190 = vector.multi_reduction <add>, %189, %cst_65 [1] : vector<32x196xf32> to vector<32xf32>
    %191 = vector.shape_cast %190 : vector<32xf32> to vector<32x1xf32>
    %cst_66 = arith.constant 0.00510204071 : f32
    %192 = vector.broadcast %cst_66 : f32 to vector<32x1xf32>
    %193 = arith.mulf %191, %192 : vector<32x1xf32>
    %194 = vector.broadcast %193 : vector<32x1xf32> to vector<32x196xf32>
    %195 = arith.subf %189, %194 : vector<32x196xf32>
    %196 = arith.mulf %195, %195 : vector<32x196xf32>
    %cst_67 = arith.constant dense<0.000000e+00> : vector<32xf32>
    %197 = vector.multi_reduction <add>, %196, %cst_67 [1] : vector<32x196xf32> to vector<32xf32>
    %198 = vector.shape_cast %197 : vector<32xf32> to vector<32x1xf32>
    %cst_68 = arith.constant 0.00510204071 : f32
    %199 = vector.broadcast %cst_68 : f32 to vector<32x1xf32>
    %200 = arith.mulf %198, %199 : vector<32x1xf32>
    %cst_69 = arith.constant 9.99999974E-6 : f32
    %201 = vector.broadcast %cst_69 : f32 to vector<32x1xf32>
    %202 = arith.addf %200, %201 : vector<32x1xf32>
    %203 = math.rsqrt %202 : vector<32x1xf32>
    %204 = arith.index_cast %187 : i32 to index
    %c0_70 = arith.constant 0 : index
    %205 = vector.load %arg2[%204, %c0_70] : memref<256x1xf32, #tpu.memory_space<vmem>>, vector<32x1xf32>
    %206 = arith.index_cast %187 : i32 to index
    %c0_71 = arith.constant 0 : index
    %207 = vector.load %arg3[%206, %c0_71] : memref<256x1xf32, #tpu.memory_space<vmem>>, vector<32x1xf32>
    %208 = arith.mulf %205, %203 : vector<32x1xf32>
    %209 = vector.broadcast %208 : vector<32x1xf32> to vector<32x196xf32>
    %210 = arith.mulf %195, %209 : vector<32x196xf32>
    %211 = vector.broadcast %207 : vector<32x1xf32> to vector<32x196xf32>
    %212 = arith.addf %210, %211 : vector<32x196xf32>
    %cst_72 = arith.constant 0.000000e+00 : f32
    %213 = vector.broadcast %cst_72 : f32 to vector<32x196xf32>
    %214 = arith.maximumf %212, %213 : vector<32x196xf32>
    %215 = arith.index_cast %187 : i32 to index
    %c0_73 = arith.constant 0 : index
    %216 = vector.load %arg4[%215, %c0_73] : memref<256x196xf32, #tpu.memory_space<vmem>>, vector<32x196xf32>
    tpu.vector_store %arg4[%215, %c0_73], %214 {strides = array<i32>} : memref<256x196xf32, #tpu.memory_space<vmem>>, vector<32x196xf32>,
    %c7_i32 = arith.constant 7 : i32
    %c32_i32_74 = arith.constant 32 : i32
    %217 = arith.muli %c7_i32, %c32_i32_74 : i32
    %218 = tpu.assume_multiple %217, 32 : i32
    %219 = arith.index_cast %218 : i32 to index
    %c0_75 = arith.constant 0 : index
    %220 = vector.load %arg1[%219, %c0_75] : memref<256x196xf32, #tpu.memory_space<vmem>>, vector<32x196xf32>
    %cst_76 = arith.constant dense<0.000000e+00> : vector<32xf32>
    %221 = vector.multi_reduction <add>, %220, %cst_76 [1] : vector<32x196xf32> to vector<32xf32>
    %222 = vector.shape_cast %221 : vector<32xf32> to vector<32x1xf32>
    %cst_77 = arith.constant 0.00510204071 : f32
    %223 = vector.broadcast %cst_77 : f32 to vector<32x1xf32>
    %224 = arith.mulf %222, %223 : vector<32x1xf32>
    %225 = vector.broadcast %224 : vector<32x1xf32> to vector<32x196xf32>
    %226 = arith.subf %220, %225 : vector<32x196xf32>
    %227 = arith.mulf %226, %226 : vector<32x196xf32>
    %cst_78 = arith.constant dense<0.000000e+00> : vector<32xf32>
    %228 = vector.multi_reduction <add>, %227, %cst_78 [1] : vector<32x196xf32> to vector<32xf32>
    %229 = vector.shape_cast %228 : vector<32xf32> to vector<32x1xf32>
    %cst_79 = arith.constant 0.00510204071 : f32
    %230 = vector.broadcast %cst_79 : f32 to vector<32x1xf32>
    %231 = arith.mulf %229, %230 : vector<32x1xf32>
    %cst_80 = arith.constant 9.99999974E-6 : f32
    %232 = vector.broadcast %cst_80 : f32 to vector<32x1xf32>
    %233 = arith.addf %231, %232 : vector<32x1xf32>
    %234 = math.rsqrt %233 : vector<32x1xf32>
    %235 = arith.index_cast %218 : i32 to index
    %c0_81 = arith.constant 0 : index
    %236 = vector.load %arg2[%235, %c0_81] : memref<256x1xf32, #tpu.memory_space<vmem>>, vector<32x1xf32>
    %237 = arith.index_cast %218 : i32 to index
    %c0_82 = arith.constant 0 : index
    %238 = vector.load %arg3[%237, %c0_82] : memref<256x1xf32, #tpu.memory_space<vmem>>, vector<32x1xf32>
    %239 = arith.mulf %236, %234 : vector<32x1xf32>
    %240 = vector.broadcast %239 : vector<32x1xf32> to vector<32x196xf32>
    %241 = arith.mulf %226, %240 : vector<32x196xf32>
    %242 = vector.broadcast %238 : vector<32x1xf32> to vector<32x196xf32>
    %243 = arith.addf %241, %242 : vector<32x196xf32>
    %cst_83 = arith.constant 0.000000e+00 : f32
    %244 = vector.broadcast %cst_83 : f32 to vector<32x196xf32>
    %245 = arith.maximumf %243, %244 : vector<32x196xf32>
    %246 = arith.index_cast %218 : i32 to index
    %c0_84 = arith.constant 0 : index
    %247 = vector.load %arg4[%246, %c0_84] : memref<256x196xf32, #tpu.memory_space<vmem>>, vector<32x196xf32>
    tpu.vector_store %arg4[%246, %c0_84], %245 {strides = array<i32>} : memref<256x196xf32, #tpu.memory_space<vmem>>, vector<32x196xf32>,
    %c8_i32 = arith.constant 8 : i32
    return
  }
  func.func @transform_0(%arg0: i32) -> (i32, i32) {
    %c0_i32 = arith.constant 0 : i32
    %c0_i32_0 = arith.constant 0 : i32
    return %arg0, %c0_i32 : i32, i32
  }
  func.func @transform_1(%arg0: i32) -> (i32, i32) {
    %c0_i32 = arith.constant 0 : i32
    %c0_i32_0 = arith.constant 0 : i32
    return %arg0, %c0_i32 : i32, i32
  }
  func.func @transform_2(%arg0: i32) -> (i32, i32) {
    %c0_i32 = arith.constant 0 : i32
    %c0_i32_0 = arith.constant 0 : i32
    return %arg0, %c0_i32 : i32, i32
  }
  func.func @transform_3(%arg0: i32) -> (i32, i32) {
    %c0_i32 = arith.constant 0 : i32
    %c0_i32_0 = arith.constant 0 : i32
    return %arg0, %c0_i32 : i32, i32
  }
}

</mosaic_0001>

<bundles_post_ra>
// kernel: batchnorm_relu.1
= control target key start
LH: loop header
LB: loop body
LE: loop exit
PB: predicated region body
PF: predicated region fallthrough
CT: control target
= control target key end

     0   :  { %vm25_vm0 = vcmask 556032   ;;  %s2875_s0 = inlined_call_operand.vmem [shape: f32[256,196], index: 0, kind: input, shape index: {}]   ;;  %s2876_s1 = inlined_call_operand.vmem [shape: f32[256,1], index: 1, kind: input, shape index: {}]   ;;  %s2877_s2 = inlined_call_operand.vmem [shape: f32[256,1], index: 2, kind: input, shape index: {}]   ;;  %s2878_s3 = inlined_call_operand.vmem [shape: f32[256,196], index: 3, kind: output, shape index: {}]  }
   0x1   :  { %v1594_v0 = vld [vmem:[%s2875_s0] sm:$0xff]  ;;  %v1599_v1 = vld [vmem:[%s2875_s0 + $0x8] sm:$0xff]  ;;  %v1616_v5 = vld [vmem:[%s2875_s0 + $0x10] sm:$0xff] }
   0x2   :  { %v1604_v2 = vld [vmem:[%s2875_s0 + $0x20] sm:$0xff]  ;;  %v26_v3 = vsel %vm25_vm0, %v1599_v1, 0.0  ;;  %v1611_v4 = vld [vmem:[%s2875_s0 + $0x28] sm:$0xff]  ;;  %v1621_v6 = vld [vmem:[%s2875_s0 + $0x18] sm:$0xff] }
   0x3   :  { %v27_v7 = vadd.f32 %v26_v3, %v1594_v0  ;;  %v34_v8 = vsel %vm25_vm0, %v1611_v4, 0.0  ;;  %v30_v9 = vsel %vm25_vm0, %v1621_v6, 0.0  ;;  %v1631_v10 = vld [vmem:[%s2875_s0 + $0x30] sm:$0xff]  ;;  %v1636_v11 = vld [vmem:[%s2875_s0 + $0x38] sm:$0xff]  ;;  %v1644_v14 = vld [vmem:[%s2875_s0 + $0x48] sm:$0xff] }
   0x4   :  { %v35_v12 = vadd.f32 %v34_v8, %v1604_v2  ;;  %v38_v13 = vsel %vm25_vm0, %v1636_v11, 0.0  ;;  %v1649_v15 = vld [vmem:[%s2875_s0 + $0x58] sm:$0xff]  ;;  %v31_v16 = vadd.f32 %v30_v9, %v1616_v5  ;;  %v1656_v18 = vld [vmem:[%s2875_s0 + $0x50] sm:$0xff]  ;;  %v1663_v20 = vld [vmem:[%s2875_s0 + $0x40] sm:$0xff]  ;;  %v187_v21 = vsel %vm25_vm0, %v1644_v14, 0.0 }
   0x5   :  { %28 = vadd.xlane.f32.xlu0 %v27_v7  ;;  %v39_v17 = vadd.f32 %v38_v13, %v1631_v10  ;;  %v191_v19 = vsel %vm25_vm0, %v1649_v15, 0.0  ;;  %v1670_v22 = vld [vmem:[%s2875_s0 + $0x68] sm:$0xff]  ;;  %v1675_v23 = vld [vmem:[%s2875_s0 + $0x78] sm:$0xff]  ;;  %v188_v25 = vadd.f32 %v1663_v20, %v187_v21  ;;  %v1682_v26 = vld [vmem:[%s2875_s0 + $0x60] sm:$0xff] }
   0x6   :  { %36 = vadd.xlane.f32.xlu1 %v35_v12  ;;  %v192_v24 = vadd.f32 %v1656_v18, %v191_v19  ;;  %v195_v27 = vsel %vm25_vm0, %v1670_v22, 0.0  ;;  %v1689_v28 = vld [vmem:[%s2875_s0 + $0x70] sm:$0xff]  ;;  %v199_v29 = vsel %vm25_vm0, %v1675_v23, 0.0  ;;  %v1696_v30 = vld [vmem:[%s2875_s0 + $0x98] sm:$0xff]  ;;  %v1701_v31 = vld [vmem:[%s2875_s0 + $0x88] sm:$0xff] }
   0x7   :  { %v196_v32 = vadd.f32 %v1682_v26, %v195_v27  ;;  %v200_v33 = vadd.f32 %v1689_v28, %v199_v29  ;;  %v1708_v34 = vld [vmem:[%s2875_s0 + $0x90] sm:$0xff]  ;;  %v354_v35 = vsel %vm25_vm0, %v1696_v30, 0.0  ;;  %v1715_v36 = vld [vmem:[%s2875_s0 + $0x80] sm:$0xff]  ;;  %v350_v37 = vsel %vm25_vm0, %v1701_v31, 0.0  ;;  %v1722_v38 = vld [vmem:[%s2875_s0 + $0xa8] sm:$0xff] }
   0x8   :  { %v1727_v39 = vld [vmem:[%s2875_s0 + $0xb8] sm:$0xff]  ;;  %v355_v40 = vadd.f32 %v1708_v34, %v354_v35  ;;  %v351_v41 = vadd.f32 %v1715_v36, %v350_v37  ;;  %v1734_v42 = vld [vmem:[%s2875_s0 + $0xa0] sm:$0xff]  ;;  %v358_v43 = vsel %vm25_vm0, %v1722_v38, 0.0  ;;  %v1741_v44 = vld [vmem:[%s2875_s0 + $0xb0] sm:$0xff] }
   0x9   :  { %32 = vadd.xlane.f32.xlu0 %v31_v16  ;;  %v362_v45 = vsel %vm25_vm0, %v1727_v39, 0.0  ;;  %v1748_v46 = vld [vmem:[%s2875_s0 + $0xd8] sm:$0xff]  ;;  %v1753_v47 = vld [vmem:[%s2875_s0 + $0xc8] sm:$0xff]  ;;  %v359_v48 = vadd.f32 %v1734_v42, %v358_v43  ;;  %v1760_v50 = vld [vmem:[%s2875_s0 + $0xd0] sm:$0xff] }
   0xa   :  { %40 = vadd.xlane.f32.xlu1 %v39_v17  ;;  %v363_v49 = vadd.f32 %v1741_v44, %v362_v45  ;;  %v517_v51 = vsel %vm25_vm0, %v1748_v46, 0.0  ;;  %v1767_v52 = vld [vmem:[%s2875_s0 + $0xc0] sm:$0xff]  ;;  %v513_v53 = vsel %vm25_vm0, %v1753_v47, 0.0  ;;  %v1774_v54 = vld [vmem:[%s2875_s0 + $0xe8] sm:$0xff]  ;;  %v1779_v55 = vld [vmem:[%s2875_s0 + $0xf8] sm:$0xff] }
   0xb   :  { %v518_v56 = vadd.f32 %v1760_v50, %v517_v51  ;;  %v514_v57 = vadd.f32 %v1767_v52, %v513_v53  ;;  %v1786_v58 = vld [vmem:[%s2875_s0 + $0xe0] sm:$0xff]  ;;  %v521_v59 = vsel %vm25_vm0, %v1774_v54, 0.0  ;;  %v1793_v60 = vld [vmem:[%s2875_s0 + $0xf0] sm:$0xff]  ;;  %v525_v61 = vsel %vm25_vm0, %v1779_v55, 0.0 }
   0xc   :  { %v522_v62 = vadd.f32 %v1786_v58, %v521_v59  ;;  %v526_v63 = vadd.f32 %v1793_v60, %v525_v61 }
   0xd   :  { %193 = vadd.xlane.f32.xlu0 %v192_v24 }
   0xe   :  { %189 = vadd.xlane.f32.xlu1 %v188_v25 }
  0x11   :  { %197 = vadd.xlane.f32.xlu0 %v196_v32 }
  0x12   :  { %201 = vadd.xlane.f32.xlu1 %v200_v33 }
  0x15   :  { %356 = vadd.xlane.f32.xlu0 %v355_v40 }
  0x16   :  { %352 = vadd.xlane.f32.xlu1 %v351_v41 }
  0x19   :  { %360 = vadd.xlane.f32.xlu0 %v359_v48 }
  0x1a   :  { %364 = vadd.xlane.f32.xlu1 %v363_v49 }
  0x1d   :  { %519 = vadd.xlane.f32.xlu0 %v518_v56 }
  0x1e   :  { %515 = vadd.xlane.f32.xlu1 %v514_v57 }
  0x21   :  { %523 = vadd.xlane.f32.xlu0 %v522_v62 }
  0x22   :  { %527 = vadd.xlane.f32.xlu1 %v526_v63 }
  0x8e   :  { %v29_v3 = vpop.xlane.xlu0 %28 }
  0x8f   :  { %v42_v7 = vmul.f32 0.0051020407, %v29_v3  ;;  %v37_v8 = vpop.xlane.xlu1 %36 }
  0x90   :  { %v44_v9 = vmul.f32 0.0051020407, %v37_v8 }
  0x91   :  { %v1800_v12 = vsub.f32 %v1594_v0, %v42_v7  ;;  %v1803_v13 = vsub.f32 %v1599_v1, %v42_v7 }
  0x92   :  { %v1806_v16 = vsub.f32 %v1604_v2, %v44_v9  ;;  %v1809_v17 = vsub.f32 %v1611_v4, %v44_v9  ;;  %v33_v19 = vpop.xlane.xlu0 %32 }
  0x93   :  { %v43_v21 = vmul.f32 0.0051020407, %v33_v19  ;;  %v41_v24 = vpop.xlane.xlu1 %40  ;;  %v54_v25 = vmul.f32 %v1800_v12, %v1800_v12  ;;  %v55_v27 = vmul.f32 %v1803_v13, %v1803_v13 }
  0x94   :  { %v45_v0 = vmul.f32 0.0051020407, %v41_v24  ;;  %v58_v1 = vmul.f32 %v1806_v16, %v1806_v16  ;;  %v59_v2 = vmul.f32 %v1809_v17, %v1809_v17 }
  0x95   :  { %v1820_v29 = vsub.f32 %v1616_v5, %v43_v21  ;;  %v1823_v4 = vsub.f32 %v1621_v6, %v43_v21  ;;  %v62_v32 = vsel %vm25_vm0, %v55_v27, 0.0 }
  0x96   :  { %v1827_v33 = vsub.f32 %v1631_v10, %v45_v0  ;;  %v1830_v35 = vsub.f32 %v1636_v11, %v45_v0  ;;  %v63_v37 = vadd.f32 %v62_v32, %v54_v25  ;;  %v194_v40 = vpop.xlane.xlu0 %193  ;;  %v70_v41 = vsel %vm25_vm0, %v59_v2, 0.0 }
  0x97   :  { %v190_v43 = vpop.xlane.xlu1 %189  ;;  %v204_v45 = vmul.f32 0.0051020407, %v194_v40  ;;  %v56_v5 = vmul.f32 %v1820_v29, %v1820_v29  ;;  %v57_v6 = vmul.f32 %v1823_v4, %v1823_v4  ;;  %v71_v49 = vadd.f32 %v70_v41, %v58_v1 }
  0x98   :  { %2918 = vst [vmem:[#allocation2_spill] sm:$0xff] %v1830_v35  ;;  %64 = vadd.xlane.f32.xlu0 %v63_v37  ;;  %v203_v48 = vmul.f32 0.0051020407, %v190_v43  ;;  %v60_v10 = vmul.f32 %v1827_v33, %v1827_v33  ;;  %v61_v11 = vmul.f32 %v1830_v35, %v1830_v35 }
  0x99   :  { %v1842_v51 = vsub.f32 %v1656_v18, %v204_v45  ;;  %v1845_v53 = vsub.f32 %v1649_v15, %v204_v45  ;;  %v66_v56 = vsel %vm25_vm0, %v57_v6, 0.0 }
  0x9a   :  { %v1849_v57 = vsub.f32 %v1663_v20, %v203_v48  ;;  %v1852_v59 = vsub.f32 %v1644_v14, %v203_v48  ;;  %v67_v61 = vadd.f32 %v66_v56, %v56_v5  ;;  %v198_v62 = vpop.xlane.xlu0 %197  ;;  %v74_v63 = vsel %vm25_vm0, %v61_v11, 0.0 }
  0x9b   :  { %2919 = vst [vmem:[#allocation3_spill] sm:$0xff] %v1842_v51  ;;  %2920 = vst [vmem:[#allocation4_spill] sm:$0xff] %v1845_v53  ;;  %v202_v3 = vpop.xlane.xlu1 %201  ;;  %v205_v7 = vmul.f32 0.0051020407, %v198_v62  ;;  %v75_v8 = vadd.f32 %v74_v63, %v60_v10  ;;  %v218_v18 = vmul.f32 %v1845_v53, %v1845_v53  ;;  %v217_v9 = vmul.f32 %v1842_v51, %v1842_v51 }
  0x9c   :  { %2921 = vst [vmem:[#allocation5_spill] sm:$0xff] %v1849_v57  ;;  %2922 = vst [vmem:[#allocation6_spill] sm:$0xff] %v1852_v59  ;;  %72 = vadd.xlane.f32.xlu0 %v71_v49  ;;  %68 = vadd.xlane.f32.xlu1 %v67_v61  ;;  %v206_v15 = vmul.f32 0.0051020407, %v202_v3  ;;  %v215_v20 = vmul.f32 %v1849_v57, %v1849_v57  ;;  %v216_v14 = vmul.f32 %v1852_v59, %v1852_v59 }
  0x9d   :  { %v1864_v19 = vsub.f32 %v1682_v26, %v205_v7  ;;  %v1867_v21 = vsub.f32 %v1670_v22, %v205_v7  ;;  %v227_v24 = vsel %vm25_vm0, %v218_v18, 0.0 }
  0x9e   :  { %v1871_v25 = vsub.f32 %v1689_v28, %v206_v15  ;;  %v1874_v27 = vsub.f32 %v1675_v23, %v206_v15  ;;  %v357_v0 = vpop.xlane.xlu0 %356  ;;  %v223_v1 = vsel %vm25_vm0, %v216_v14, 0.0  ;;  %v228_v41 = vadd.f32 %v227_v24, %v217_v9 }
  0x9f   :  { %2923 = vst [vmem:[#allocation7_spill] sm:$0xff] %v1864_v19  ;;  %2924 = vst [vmem:[#allocation8_spill] sm:$0xff] %v1867_v21  ;;  %v353_v2 = vpop.xlane.xlu1 %352  ;;  %v367_v32 = vmul.f32 0.0051020407, %v357_v0  ;;  %v224_v37 = vadd.f32 %v223_v1, %v215_v20  ;;  %v219_v26 = vmul.f32 %v1864_v19, %v1864_v19  ;;  %v220_v22 = vmul.f32 %v1867_v21, %v1867_v21 }
  0xa0   :  { %2925 = vst [vmem:[#allocation9_spill] sm:$0xff] %v1871_v25  ;;  %2926 = vst [vmem:[#allocation10_spill] sm:$0xff] %v1874_v27  ;;  %76 = vadd.xlane.f32.xlu1 %v75_v8  ;;  %v366_v40 = vmul.f32 0.0051020407, %v353_v2  ;;  %v221_v28 = vmul.f32 %v1871_v25, %v1871_v25  ;;  %v222_v23 = vmul.f32 %v1874_v27, %v1874_v27 }
  0xa1   :  { %v1886_v43 = vsub.f32 %v1708_v34, %v367_v32  ;;  %v1889_v45 = vsub.f32 %v1696_v30, %v367_v32  ;;  %225 = vadd.xlane.f32.xlu0 %v224_v37  ;;  %v231_v5 = vsel %vm25_vm0, %v220_v22, 0.0 }
  0xa2   :  { %v1893_v6 = vsub.f32 %v1715_v36, %v366_v40  ;;  %v1896_v48 = vsub.f32 %v1701_v31, %v366_v40  ;;  %v361_v49 = vpop.xlane.xlu0 %360  ;;  %v232_v10 = vadd.f32 %v231_v5, %v219_v26  ;;  %v235_v11 = vsel %vm25_vm0, %v222_v23, 0.0 }
  0xa3   :  { %2927 = vst [vmem:[#allocation11_spill] sm:$0xff] %v1886_v43  ;;  %2928 = vst [vmem:[#allocation12_spill] sm:$0xff] %v1889_v45  ;;  %v365_v56 = vpop.xlane.xlu1 %364  ;;  %v368_v61 = vmul.f32 0.0051020407, %v361_v49  ;;  %v236_v34 = vadd.f32 %v235_v11, %v221_v28  ;;  %v381_v30 = vmul.f32 %v1889_v45, %v1889_v45  ;;  %v380_v31 = vmul.f32 %v1886_v43, %v1886_v43  ;;  %v2214_v45 = vld [vmem:[%s2875_s0 + $0x1e0] sm:$0xff] }
  0xa4   :  { %2929 = vst [vmem:[#allocation13_spill] sm:$0xff] %v1893_v6  ;;  %2930 = vst [vmem:[#allocation14_spill] sm:$0xff] %v1896_v48  ;;  %229 = vadd.xlane.f32.xlu1 %v228_v41  ;;  %v369_v62 = vmul.f32 0.0051020407, %v365_v56  ;;  %v378_v63 = vmul.f32 %v1893_v6, %v1893_v6  ;;  %v379_v36 = vmul.f32 %v1896_v48, %v1896_v48  ;;  %v2195_v48 = vld [vmem:[%s2875_s0 + $0x1d0] sm:$0xff] }
  0xa5   :  { %v1908_v3 = vsub.f32 %v1734_v42, %v368_v61  ;;  %v1911_v7 = vsub.f32 %v1722_v38, %v368_v61  ;;  %233 = vadd.xlane.f32.xlu0 %v232_v10  ;;  %v390_v8 = vsel %vm25_vm0, %v381_v30, 0.0 }
  0xa6   :  { %v1915_v18 = vsub.f32 %v1741_v44, %v369_v62  ;;  %v1918_v15 = vsub.f32 %v1727_v39, %v369_v62  ;;  %v520_v20 = vpop.xlane.xlu0 %519  ;;  %v386_v14 = vsel %vm25_vm0, %v379_v36, 0.0  ;;  %v391_v2 = vadd.f32 %v390_v8, %v380_v31 }
  0xa7   :  { %2931 = vst [vmem:[#allocation15_spill] sm:$0xff] %v1908_v3  ;;  %2932 = vst [vmem:[#allocation16_spill] sm:$0xff] %v1911_v7  ;;  %v516_v9 = vpop.xlane.xlu1 %515  ;;  %v530_v24 = vmul.f32 0.0051020407, %v520_v20  ;;  %v387_v0 = vadd.f32 %v386_v14, %v378_v63  ;;  %v382_v42 = vmul.f32 %v1908_v3, %v1908_v3  ;;  %v383_v38 = vmul.f32 %v1911_v7, %v1911_v7  ;;  %v2188_v7 = vld [vmem:[%s2875_s0 + $0x1c0] sm:$0xff] }
  0xa8   :  { %2933 = vst [vmem:[#allocation17_spill] sm:$0xff] %v1915_v18  ;;  %2934 = vst [vmem:[#allocation18_spill] sm:$0xff] %v1918_v15  ;;  %237 = vadd.xlane.f32.xlu1 %v236_v34  ;;  %v529_v1 = vmul.f32 0.0051020407, %v516_v9  ;;  %v384_v44 = vmul.f32 %v1915_v18, %v1915_v18  ;;  %v385_v39 = vmul.f32 %v1918_v15, %v1918_v15  ;;  %v2221_v15 = vld [vmem:[%s2875_s0 + $0x1f0] sm:$0xff] }
  0xa9   :  { %v1930_v32 = vsub.f32 %v1760_v50, %v530_v24  ;;  %v1933_v37 = vsub.f32 %v1748_v46, %v530_v24  ;;  %388 = vadd.xlane.f32.xlu0 %v387_v0  ;;  %v394_v26 = vsel %vm25_vm0, %v383_v38, 0.0  ;;  %v1409_v24 = vld [vmem:[%s2875_s0 + $0x110] sm:$0xff]  ;;  %v1412_v38 = vld [vmem:[%s2875_s0 + $0x128] sm:$0xff] }
  0xaa   :  { %v1937_v22 = vsub.f32 %v1767_v52, %v529_v1  ;;  %v1940_v40 = vsub.f32 %v1753_v47, %v529_v1  ;;  %v524_v41 = vpop.xlane.xlu0 %523  ;;  %v395_v28 = vadd.f32 %v394_v26, %v382_v42  ;;  %v398_v23 = vsel %vm25_vm0, %v385_v39, 0.0  ;;  %v1408_v42 = vld [vmem:[%s2875_s0 + $0x108] sm:$0xff]  ;;  %v1411_v26 = vld [vmem:[%s2875_s0 + $0x120] sm:$0xff] }
  0xab   :  { %2935 = vst [vmem:[#allocation19_spill] sm:$0xff] %v1930_v32  ;;  %2936 = vst [vmem:[#allocation20_spill] sm:$0xff] %v1933_v37  ;;  %v528_v5 = vpop.xlane.xlu1 %527  ;;  %v531_v49 = vmul.f32 0.0051020407, %v524_v41  ;;  %v399_v50 = vadd.f32 %v398_v23, %v384_v44  ;;  %v544_v46 = vmul.f32 %v1933_v37, %v1933_v37  ;;  %v543_v47 = vmul.f32 %v1930_v32, %v1930_v32  ;;  %v1407_v44 = vld [vmem:[%s2875_s0 + $0x100] sm:$0xff] }
  0xac   :  { %2937 = vst [vmem:[#allocation21_spill] sm:$0xff] %v1937_v22  ;;  %2938 = vst [vmem:[#allocation22_spill] sm:$0xff] %v1940_v40  ;;  %392 = vadd.xlane.f32.xlu1 %v391_v2  ;;  %v532_v10 = vmul.f32 0.0051020407, %v528_v5  ;;  %v541_v11 = vmul.f32 %v1937_v22, %v1937_v22  ;;  %v542_v52 = vmul.f32 %v1940_v40, %v1940_v40  ;;  %v676_v39 = vsel %vm25_vm0, %v1408_v42, 0.0 }
  0xad   :  { %v1952_v56 = vsub.f32 %v1786_v58, %v531_v49  ;;  %v1955_v61 = vsub.f32 %v1774_v54, %v531_v49  ;;  %396 = vadd.xlane.f32.xlu0 %v395_v28  ;;  %v553_v34 = vsel %vm25_vm0, %v544_v46, 0.0  ;;  %v1410_v54 = vld [vmem:[%s2875_s0 + $0x118] sm:$0xff]  ;;  %v684_v41 = vsel %vm25_vm0, %v1412_v38, 0.0  ;;  %v1413_v49 = vld [vmem:[%s2875_s0 + $0x130] sm:$0xff] }
  0xae   :  { %v1959_v30 = vsub.f32 %v1793_v60, %v532_v10  ;;  %v1962_v62 = vsub.f32 %v1779_v55, %v532_v10  ;;  %v549_v63 = vsel %vm25_vm0, %v542_v52, 0.0  ;;  %v554_v8 = vadd.f32 %v553_v34, %v543_v47  ;;  %v1414_v28 = vld [vmem:[%s2875_s0 + $0x138] sm:$0xff] }
  0xaf   :  { %2939 = vst [vmem:[#allocation23_spill] sm:$0xff] %v1952_v56  ;;  %2940 = vst [vmem:[#allocation24_spill] sm:$0xff] %v1955_v61  ;;  %v550_v36 = vadd.f32 %v549_v63, %v541_v11  ;;  %v545_v31 = vmul.f32 %v1952_v56, %v1952_v56  ;;  %v546_v58 = vmul.f32 %v1955_v61, %v1955_v61  ;;  %v680_v0 = vsel %vm25_vm0, %v1410_v54, 0.0 }
  0xb0   :  { %2941 = vst [vmem:[#allocation25_spill] sm:$0xff] %v1959_v30  ;;  %2942 = vst [vmem:[#allocation26_spill] sm:$0xff] %v1962_v62  ;;  %400 = vadd.xlane.f32.xlu1 %v399_v50  ;;  %v547_v60 = vmul.f32 %v1959_v30, %v1959_v30  ;;  %v548_v55 = vmul.f32 %v1962_v62, %v1962_v62  ;;  %v681_v2 = vadd.f32 %v1409_v24, %v680_v0  ;;  %v2169_v62 = vld [vmem:[%s2875_s0 + $0x1b0] sm:$0xff] }
  0xb1   :  { %551 = vadd.xlane.f32.xlu0 %v550_v36  ;;  %v557_v20 = vsel %vm25_vm0, %v546_v58, 0.0  ;;  %v677_v23 = vadd.f32 %v1407_v44, %v676_v39  ;;  %v685_v5 = vadd.f32 %v1411_v26, %v684_v41  ;;  %v688_v50 = vsel %vm25_vm0, %v1414_v28, 0.0 }
  0xb2   :  { %v558_v14 = vadd.f32 %v557_v20, %v545_v31  ;;  %v561_v9 = vsel %vm25_vm0, %v548_v55, 0.0  ;;  %v689_v46 = vadd.f32 %v1413_v49, %v688_v50 }
  0xb3   :  { %v562_v1 = vadd.f32 %v561_v9, %v547_v60 }
  0xb4   :  { %555 = vadd.xlane.f32.xlu1 %v554_v8 }
  0xb5   :  { %559 = vadd.xlane.f32.xlu0 %v558_v14 }
  0xb8   :  { %563 = vadd.xlane.f32.xlu1 %v562_v1 }
  0xb9   :  { %682 = vadd.xlane.f32.xlu0 %v681_v2 }
  0xbc   :  { %678 = vadd.xlane.f32.xlu1 %v677_v23 }
  0xbd   :  { %686 = vadd.xlane.f32.xlu0 %v685_v5 }
  0xc0   :  { %690 = vadd.xlane.f32.xlu1 %v689_v46 }
 0x121   :  { %v2003_v10 = vpop.xlane.xlu0 %64 }
 0x125   :  { %v2005_v11 = vpop.xlane.xlu1 %68  ;;  %v2007_v52 = vpop.xlane.xlu0 %72 }
 0x129   :  { %v2009_v47 = vpop.xlane.xlu1 %76 }
 0x12a   :  { %v2011_v34 = vpop.xlane.xlu0 %225 }
 0x12d   :  { %v2013_v63 = vpop.xlane.xlu1 %229 }
 0x12e   :  { %v2015_v36 = vpop.xlane.xlu0 %233 }
 0x131   :  { %v2017_v31 = vpop.xlane.xlu1 %237 }
 0x132   :  { %v2019_v58 = vpop.xlane.xlu0 %388 }
 0x135   :  { %v2021_v8 = vpop.xlane.xlu1 %392 }
 0x136   :  { %v2023_v60 = vpop.xlane.xlu0 %396 }
 0x139   :  { %v2025_v55 = vpop.xlane.xlu1 %400 }
 0x13a   :  { %v2027_v20 = vpop.xlane.xlu0 %551 }
 0x13d   :  { %v2029_v14 = vpop.xlane.xlu1 %555 }
 0x13e   :  { %v2031_v9 = vpop.xlane.xlu0 %559 }
 0x141   :  { %v2033_v0 = vpop.xlane.xlu1 %563 }
 0x142   :  { %v683_v1 = vpop.xlane.xlu0 %682 }
 0x143   :  { %v693_v2 = vmul.f32 0.0051020407, %v683_v1 }
 0x145   :  { %v2035_v39 = vsub.f32 %v1409_v24, %v693_v2  ;;  %v2037_v41 = vsub.f32 %v1410_v54, %v693_v2  ;;  %v679_v23 = vpop.xlane.xlu1 %678 }
 0x146   :  { %v692_v5 = vmul.f32 0.0051020407, %v679_v23  ;;  %v687_v50 = vpop.xlane.xlu0 %686 }
 0x147   :  { %2943 = vst [vmem:[#allocation27_spill] sm:$0xff] %v2035_v39  ;;  %2944 = vst [vmem:[#allocation28_spill] sm:$0xff] %v2037_v41  ;;  %v694_v46 = vmul.f32 0.0051020407, %v687_v50  ;;  %v706_v61 = vmul.f32 %v2035_v39, %v2035_v39  ;;  %v707_v56 = vmul.f32 %v2037_v41, %v2037_v41  ;;  %v2143_v41 = vld [vmem:[%s2875_s0 + $0x190] sm:$0xff] }
 0x148   :  { %v2043_v40 = vsub.f32 %v1407_v44, %v692_v5  ;;  %v2045_v22 = vsub.f32 %v1408_v42, %v692_v5 }
 0x149   :  { %v2047_v37 = vsub.f32 %v1411_v26, %v694_v46  ;;  %v2049_v24 = vsub.f32 %v1412_v38, %v694_v46  ;;  %v691_v54 = vpop.xlane.xlu1 %690  ;;  %v716_v1 = vsel %vm25_vm0, %v707_v56, 0.0  ;;  %v2069_v46 = vld [vmem:[%s2875_s0 + $0x148] sm:$0xff] }
 0x14a   :  { %2945 = vst [vmem:[#allocation29_spill] sm:$0xff] %v2043_v40  ;;  %2946 = vst [vmem:[#allocation30_spill] sm:$0xff] %v2045_v22  ;;  %v695_v2 = vmul.f32 0.0051020407, %v691_v54  ;;  %v717_v23 = vadd.f32 %v716_v1, %v706_v61  ;;  %v704_v50 = vmul.f32 %v2043_v40, %v2043_v40  ;;  %v705_v39 = vmul.f32 %v2045_v22, %v2045_v22  ;;  %v2074_v54 = vld [vmem:[%s2875_s0 + $0x158] sm:$0xff]  ;;  %v2136_v22 = vld [vmem:[%s2875_s0 + $0x180] sm:$0xff] }
 0x14b   :  { %2947 = vst [vmem:[#allocation31_spill] sm:$0xff] %v2047_v37  ;;  %2948 = vst [vmem:[#allocation32_spill] sm:$0xff] %v2049_v24  ;;  %v708_v44 = vmul.f32 %v2047_v37, %v2047_v37  ;;  %v709_v42 = vmul.f32 %v2049_v24, %v2049_v24  ;;  %v2117_v24 = vld [vmem:[%s2875_s0 + $0x160] sm:$0xff] }
 0x14c   :  { %v2060_v26 = vsub.f32 %v1413_v49, %v695_v2  ;;  %v2062_v38 = vsub.f32 %v1414_v28, %v695_v2  ;;  %718 = vadd.xlane.f32.xlu1 %v717_v23  ;;  %v712_v56 = vsel %vm25_vm0, %v705_v39, 0.0  ;;  %v2084_v2 = vld [vmem:[%s2875_s0 + $0x140] sm:$0xff]  ;;  %v839_v23 = vsel %vm25_vm0, %v2069_v46, 0.0 }
 0x14d   :  { %v713_v61 = vadd.f32 %v712_v56, %v704_v50  ;;  %v720_v5 = vsel %vm25_vm0, %v709_v42, 0.0  ;;  %v2091_v50 = vld [vmem:[%s2875_s0 + $0x150] sm:$0xff]  ;;  %v843_v42 = vsel %vm25_vm0, %v2074_v54, 0.0 }
 0x14e   :  { %2949 = vst [vmem:[#allocation33_spill] sm:$0xff] %v2060_v26  ;;  %2950 = vst [vmem:[#allocation34_spill] sm:$0xff] %v2062_v38  ;;  %v710_v28 = vmul.f32 %v2060_v26, %v2060_v26  ;;  %v711_v49 = vmul.f32 %v2062_v38, %v2062_v38  ;;  %v721_v39 = vadd.f32 %v720_v5, %v708_v44  ;;  %v2098_v44 = vld [vmem:[%s2875_s0 + $0x178] sm:$0xff]  ;;  %v2162_v26 = vld [vmem:[%s2875_s0 + $0x1a0] sm:$0xff] }
 0x14f   :  { %714 = vadd.xlane.f32.xlu0 %v713_v61  ;;  %v2103_v61 = vld [vmem:[%s2875_s0 + $0x168] sm:$0xff]  ;;  %v840_v5 = vadd.f32 %v2084_v2, %v839_v23 }
 0x150   :  { %v724_v1 = vsel %vm25_vm0, %v711_v49, 0.0  ;;  %v844_v49 = vadd.f32 %v2091_v50, %v843_v42  ;;  %v2124_v23 = vld [vmem:[%s2875_s0 + $0x188] sm:$0xff]  ;;  %v2129_v42 = vld [vmem:[%s2875_s0 + $0x198] sm:$0xff] }
 0x151   :  { %v725_v56 = vadd.f32 %v724_v1, %v710_v28  ;;  %v2110_v28 = vld [vmem:[%s2875_s0 + $0x170] sm:$0xff]  ;;  %v851_v1 = vsel %vm25_vm0, %v2098_v44, 0.0  ;;  %v1002_v40 = vsel %vm25_vm0, %v2124_v23, 0.0 }
 0x153   :  { %726 = vadd.xlane.f32.xlu1 %v725_v56  ;;  %722 = vadd.xlane.f32.xlu0 %v721_v39  ;;  %v847_v39 = vsel %vm25_vm0, %v2103_v61, 0.0  ;;  %v852_v56 = vadd.f32 %v2110_v28, %v851_v1  ;;  %v2155_v1 = vld [vmem:[%s2875_s0 + $0x1b8] sm:$0xff] }
 0x154   :  { %v848_v37 = vadd.f32 %v2117_v24, %v847_v39  ;;  %v1003_v39 = vadd.f32 %v2136_v22, %v1002_v40  ;;  %v2176_v40 = vld [vmem:[%s2875_s0 + $0x1c8] sm:$0xff] }
 0x155   :  { %v1165_v3 = vsel %vm25_vm0, %v2176_v40, 0.0 }
 0x157   :  { %841 = vadd.xlane.f32.xlu1 %v840_v5  ;;  %845 = vadd.xlane.f32.xlu0 %v844_v49  ;;  %v1006_v5 = vsel %vm25_vm0, %v2129_v42, 0.0  ;;  %v2150_v49 = vld [vmem:[%s2875_s0 + $0x1a8] sm:$0xff] }
 0x158   :  { %v1007_v38 = vadd.f32 %v2143_v41, %v1006_v5  ;;  %v1010_v32 = vsel %vm25_vm0, %v2150_v49, 0.0 }
 0x159   :  { %v1011_v5 = vadd.f32 %v2162_v26, %v1010_v32  ;;  %v2202_v32 = vld [vmem:[%s2875_s0 + $0x1e8] sm:$0xff] }
 0x15a   :  { %v1173_v43 = vsel %vm25_vm0, %v2202_v32, 0.0 }
 0x15b   :  { %853 = vadd.xlane.f32.xlu1 %v852_v56  ;;  %849 = vadd.xlane.f32.xlu0 %v848_v37  ;;  %v1014_v37 = vsel %vm25_vm0, %v2155_v1, 0.0  ;;  %v2181_v56 = vld [vmem:[%s2875_s0 + $0x1d8] sm:$0xff] }
 0x15c   :  { %v1015_v30 = vadd.f32 %v2169_v62, %v1014_v37  ;;  %v1166_v37 = vadd.f32 %v2188_v7, %v1165_v3  ;;  %v1174_v3 = vadd.f32 %v2214_v45, %v1173_v43 }
 0x15f   :  { %1004 = vadd.xlane.f32.xlu0 %v1003_v39  ;;  %1008 = vadd.xlane.f32.xlu1 %v1007_v38  ;;  %v1169_v38 = vsel %vm25_vm0, %v2181_v56, 0.0  ;;  %v2207_v39 = vld [vmem:[%s2875_s0 + $0x1f8] sm:$0xff] }
 0x160   :  { %v1170_v6 = vadd.f32 %v2195_v48, %v1169_v38  ;;  %v1570_v38 = vmov 0  }
 0x161   :  { %1504 = vset.pattern.permute.xlu1 %v1570_v38  ;;  %1505 = vset.pattern.permute.xlu0 %v1570_v38 }
 0x163   :  { %1012 = vadd.xlane.f32.xlu0 %v1011_v5  ;;  %1016 = vadd.xlane.f32.xlu1 %v1015_v30  ;;  %v1177_v30 = vsel %vm25_vm0, %v2207_v39, 0.0 }
 0x164   :  { %v1178_v5 = vadd.f32 %v2221_v15, %v1177_v30 }
 0x167   :  { %1167 = vadd.xlane.f32.xlu0 %v1166_v37  ;;  %1171 = vadd.xlane.f32.xlu1 %v1170_v6 }
 0x16b   :  { %1175 = vadd.xlane.f32.xlu0 %v1174_v3  ;;  %1179 = vadd.xlane.f32.xlu1 %v1178_v5 }
 0x1d5   :  { %v2227_v18 = vpop.xlane.xlu1 %718 }
 0x1d8   :  { %v2229_v21 = vpop.xlane.xlu0 %714 }
 0x1dc   :  { %v2231_v19 = vpop.xlane.xlu1 %726  ;;  %v2233_v59 = vpop.xlane.xlu0 %722 }
 0x1e0   :  { %v842_v57 = vpop.xlane.xlu1 %841  ;;  %v846_v37 = vpop.xlane.xlu0 %845 }
 0x1e1   :  { %v855_v6 = vmul.f32 0.0051020407, %v842_v57  ;;  %v856_v53 = vmul.f32 0.0051020407, %v846_v37 }
 0x1e3   :  { %v2236_v43 = vsub.f32 %v2084_v2, %v855_v6  ;;  %v2239_v30 = vsub.f32 %v2069_v46, %v855_v6  ;;  %v2242_v3 = vsub.f32 %v2091_v50, %v856_v53  ;;  %v2245_v5 = vsub.f32 %v2074_v54, %v856_v53 }
 0x1e4   :  { %v854_v38 = vpop.xlane.xlu1 %853  ;;  %v850_v51 = vpop.xlane.xlu0 %849 }
 0x1e5   :  { %2951 = vst [vmem:[#allocation35_spill] sm:$0xff] %v2236_v43  ;;  %2952 = vst [vmem:[#allocation36_spill] sm:$0xff] %v2239_v30  ;;  %v858_v27 = vmul.f32 0.0051020407, %v854_v38  ;;  %v857_v25 = vmul.f32 0.0051020407, %v850_v51  ;;  %v867_v57 = vmul.f32 %v2236_v43, %v2236_v43  ;;  %v868_v2 = vmul.f32 %v2239_v30, %v2239_v30 }
 0x1e6   :  { %2953 = vst [vmem:[#allocation37_spill] sm:$0xff] %v2242_v3  ;;  %2954 = vst [vmem:[#allocation38_spill] sm:$0xff] %v2245_v5  ;;  %v869_v46 = vmul.f32 %v2242_v3, %v2242_v3  ;;  %v870_v50 = vmul.f32 %v2245_v5, %v2245_v5 }
 0x1e7   :  { %v2256_v37 = vsub.f32 %v2110_v28, %v858_v27  ;;  %v2259_v53 = vsub.f32 %v2098_v44, %v858_v27  ;;  %v2262_v51 = vsub.f32 %v2117_v24, %v857_v25  ;;  %v2265_v54 = vsub.f32 %v2103_v61, %v857_v25 }
 0x1e8   :  { %v1005_v6 = vpop.xlane.xlu0 %1004  ;;  %v875_v38 = vsel %vm25_vm0, %v868_v2, 0.0  ;;  %v879_v3 = vsel %vm25_vm0, %v870_v50, 0.0  ;;  %v1009_v30 = vpop.xlane.xlu1 %1008 }
 0x1e9   :  { %2955 = vst [vmem:[#allocation39_spill] sm:$0xff] %v2256_v37  ;;  %2956 = vst [vmem:[#allocation40_spill] sm:$0xff] %v2259_v53  ;;  %v1018_v43 = vmul.f32 0.0051020407, %v1005_v6  ;;  %v876_v5 = vadd.f32 %v875_v38, %v867_v57  ;;  %v880_v35 = vadd.f32 %v879_v3, %v869_v46  ;;  %v1019_v28 = vmul.f32 0.0051020407, %v1009_v30 }
 0x1ea   :  { %v873_v27 = vmul.f32 %v2256_v37, %v2256_v37  ;;  %v874_v24 = vmul.f32 %v2259_v53, %v2259_v53  ;;  %v871_v25 = vmul.f32 %v2262_v51, %v2262_v51  ;;  %v872_v44 = vmul.f32 %v2265_v54, %v2265_v54 }
 0x1eb   :  { %v2278_v61 = vsub.f32 %v2136_v22, %v1018_v43  ;;  %v2281_v2 = vsub.f32 %v2124_v23, %v1018_v43  ;;  %877 = vadd.xlane.f32.xlu0 %v876_v5  ;;  %881 = vadd.xlane.f32.xlu1 %v880_v35  ;;  %v2284_v30 = vsub.f32 %v2143_v41, %v1019_v28 }
 0x1ec   :  { %v2287_v3 = vsub.f32 %v2129_v42, %v1019_v28  ;;  %v1013_v57 = vpop.xlane.xlu0 %1012  ;;  %v887_v46 = vsel %vm25_vm0, %v874_v24, 0.0  ;;  %v883_v50 = vsel %vm25_vm0, %v872_v44, 0.0  ;;  %v1017_v6 = vpop.xlane.xlu1 %1016 }
 0x1ed   :  { %v1020_v38 = vmul.f32 0.0051020407, %v1013_v57  ;;  %v888_v22 = vadd.f32 %v887_v46, %v873_v27  ;;  %v884_v53 = vadd.f32 %v883_v50, %v871_v25  ;;  %v1021_v37 = vmul.f32 0.0051020407, %v1017_v6 }
 0x1ee   :  { %v1030_v23 = vmul.f32 %v2278_v61, %v2278_v61  ;;  %v1031_v35 = vmul.f32 %v2281_v2, %v2281_v2  ;;  %v1032_v41 = vmul.f32 %v2284_v30, %v2284_v30  ;;  %v1033_v42 = vmul.f32 %v2287_v3, %v2287_v3 }
 0x1ef   :  { %v2300_v43 = vsub.f32 %v2162_v26, %v1020_v38  ;;  %v2303_v5 = vsub.f32 %v2150_v49, %v1020_v38  ;;  %889 = vadd.xlane.f32.xlu1 %v888_v22  ;;  %885 = vadd.xlane.f32.xlu0 %v884_v53  ;;  %v2306_v28 = vsub.f32 %v2169_v62, %v1021_v37 }
 0x1f0   :  { %v2309_v27 = vsub.f32 %v2155_v1, %v1021_v37  ;;  %v1168_v24 = vpop.xlane.xlu0 %1167  ;;  %v1038_v25 = vsel %vm25_vm0, %v1031_v35, 0.0  ;;  %v1172_v44 = vpop.xlane.xlu1 %1171  ;;  %v1042_v57 = vsel %vm25_vm0, %v1033_v42, 0.0  ;;  %v79_v35 = vmul.f32 0.0051020407, %v2005_v11 }
 0x1f1   :  { %v1181_v46 = vmul.f32 0.0051020407, %v1168_v24  ;;  %v1039_v26 = vadd.f32 %v1038_v25, %v1030_v23  ;;  %v1182_v50 = vmul.f32 0.0051020407, %v1172_v44  ;;  %v1043_v6 = vadd.f32 %v1042_v57, %v1032_v41 }
 0x1f2   :  { %v1034_v49 = vmul.f32 %v2300_v43, %v2300_v43  ;;  %v1035_v62 = vmul.f32 %v2303_v5, %v2303_v5  ;;  %v1036_v1 = vmul.f32 %v2306_v28, %v2306_v28  ;;  %v1037_v37 = vmul.f32 %v2309_v27, %v2309_v27 }
 0x1f3   :  { %v2322_v53 = vsub.f32 %v2188_v7, %v1181_v46  ;;  %v2325_v38 = vsub.f32 %v2176_v40, %v1181_v46  ;;  %1040 = vadd.xlane.f32.xlu0 %v1039_v26  ;;  %v2328_v22 = vsub.f32 %v2195_v48, %v1182_v50  ;;  %v2331_v23 = vsub.f32 %v2181_v56, %v1182_v50 }
 0x1f4   :  { %v1176_v41 = vpop.xlane.xlu0 %1175  ;;  %1044 = vadd.xlane.f32.xlu1 %v1043_v6  ;;  %v1046_v42 = vsel %vm25_vm0, %v1035_v62, 0.0  ;;  %v1180_v24 = vpop.xlane.xlu1 %1179  ;;  %v1050_v7 = vsel %vm25_vm0, %v1037_v37, 0.0 }
 0x1f5   :  { %v1183_v25 = vmul.f32 0.0051020407, %v1176_v41  ;;  %v1047_v44 = vadd.f32 %v1046_v42, %v1034_v49  ;;  %v1184_v40 = vmul.f32 0.0051020407, %v1180_v24  ;;  %v1051_v57 = vadd.f32 %v1050_v7, %v1036_v1 }
 0x1f6   :  { %v1193_v48 = vmul.f32 %v2322_v53, %v2322_v53  ;;  %v1194_v56 = vmul.f32 %v2325_v38, %v2325_v38  ;;  %v1195_v11 = vmul.f32 %v2328_v22, %v2328_v22  ;;  %v1196_v46 = vmul.f32 %v2331_v23, %v2331_v23 }
 0x1f7   :  { %v2345_v26 = vsub.f32 %v2214_v45, %v1183_v25  ;;  %v2348_v50 = vsub.f32 %v2202_v32, %v1183_v25  ;;  %1048 = vadd.xlane.f32.xlu0 %v1047_v44  ;;  %v2351_v6 = vsub.f32 %v2221_v15, %v1184_v40  ;;  %v2354_v49 = vsub.f32 %v2207_v39, %v1184_v40 }
 0x1f8   :  { %v1201_v62 = vsel %vm25_vm0, %v1194_v56, 0.0  ;;  %v1205_v1 = vsel %vm25_vm0, %v1196_v46, 0.0  ;;  %v83_v32 = vadd.f32 1e-05, %v79_v35  ;;  %v80_v42 = vmul.f32 0.0051020407, %v2007_v52 }
 0x1f9   :  { %v1202_v37 = vadd.f32 %v1201_v62, %v1193_v48  ;;  %v1197_v41 = vmul.f32 %v2345_v26, %v2345_v26  ;;  %v1198_v45 = vmul.f32 %v2348_v50, %v2348_v50  ;;  %v1200_v15 = vmul.f32 %v2354_v49, %v2354_v49 }
 0x1fa   :  { %v1206_v39 = vadd.f32 %v1205_v1, %v1195_v11  ;;  %v1199_v7 = vmul.f32 %v2351_v6, %v2351_v6  ;;  %1506 = vrsqrt.f32 %v83_v32  ;;  %v84_v40 = vadd.f32 1e-05, %v80_v42 }
 0x1fb   :  { %1052 = vadd.xlane.f32.xlu0 %v1051_v57  ;;  %1203 = vadd.xlane.f32.xlu1 %v1202_v37  ;;  %v1209_v24 = vsel %vm25_vm0, %v1198_v45, 0.0  ;;  %v1213_v44 = vsel %vm25_vm0, %v1200_v15, 0.0  ;;  %v81_v35 = vmul.f32 0.0051020407, %v2009_v47  ;;  %v78_v52 = vmul.f32 0.0051020407, %v2003_v10 }
 0x1fc   :  { %v1210_v25 = vadd.f32 %v1209_v24, %v1197_v41  ;;  %v1214_v48 = vadd.f32 %v1213_v44, %v1199_v7  ;;  %1508 = vrsqrt.f32 %v84_v40  ;;  %v239_v11 = vmul.f32 0.0051020407, %v2011_v34  ;;  %v91_v10 = vld [vmem:[%s2876_s1 + $0x8] sm:$0xff]  ;;  %v92_v34 = vld [vmem:[%s2876_s1 + $0x10] sm:$0xff]  ;;  %v93_v15 = vld [vmem:[%s2876_s1 + $0x18] sm:$0xff] }
 0x1fd   :  { %v85_v57 = vadd.f32 1e-05, %v81_v35  ;;  %v82_v56 = vadd.f32 1e-05, %v78_v52  ;;  %v242_v62 = vmul.f32 0.0051020407, %v2017_v31 }
 0x1fe   :  { %v243_v46 = vadd.f32 1e-05, %v239_v11  ;;  %v240_v45 = vmul.f32 0.0051020407, %v2013_v63  ;;  %v402_v31 = vmul.f32 0.0051020407, %v2019_v58 }
 0x1ff   :  { %1207 = vadd.xlane.f32.xlu0 %v1206_v39  ;;  %1211 = vadd.xlane.f32.xlu1 %v1210_v25  ;;  %1510 = vrsqrt.f32 %v85_v57  ;;  %v246_v37 = vadd.f32 1e-05, %v242_v62  ;;  %v90_v24 = vld [vmem:[%s2876_s1] sm:$0xff]  ;;  %v241_v25 = vmul.f32 0.0051020407, %v2015_v36 }
 0x200   :  { %1512 = vrsqrt.f32 %v82_v56  ;;  %v244_v7 = vadd.f32 1e-05, %v240_v45  ;;  %v406_v40 = vadd.f32 1e-05, %v402_v31  ;;  %v405_v63 = vmul.f32 0.0051020407, %v2025_v55 }
 0x201   :  { %1514 = vrsqrt.f32 %v243_v46  ;;  %v1343_v58 = vld [vmem:[%s2876_s1 + $0x20] sm:$0xff]  ;;  %v245_v57 = vadd.f32 1e-05, %v241_v25  ;;  %v1346_v55 = vld [vmem:[%s2876_s1 + $0x38] sm:$0xff]  ;;  %v95_v46 = vld [vmem:[%s2877_s2 + $0x8] sm:$0xff] }
 0x202   :  { %1516 = vrsqrt.f32 %v246_v37  ;;  %v409_v36 = vadd.f32 1e-05, %v405_v63  ;;  %v403_v37 = vmul.f32 0.0051020407, %v2021_v8  ;;  %v404_v45 = vmul.f32 0.0051020407, %v2023_v60 }
 0x203   :  { %1215 = vadd.xlane.f32.xlu0 %v1214_v48  ;;  %v94_v48 = vld [vmem:[%s2877_s2] sm:$0xff]  ;;  %1518 = vrsqrt.f32 %v244_v7  ;;  %v568_v31 = vmul.f32 0.0051020407, %v2033_v0  ;;  %v1345_v0 = vld [vmem:[%s2876_s1 + $0x30] sm:$0xff]  ;;  %v1370_v63 = vld [vmem:[%s2876_s1 + $0x58] sm:$0xff] }
 0x204   :  { %1520 = vrsqrt.f32 %v406_v40  ;;  %v408_v60 = vadd.f32 1e-05, %v404_v45 }
 0x205   :  { %1522 = vrsqrt.f32 %v245_v57  ;;  %v572_v25 = vadd.f32 1e-05, %v568_v31  ;;  %v1372_v57 = vld [vmem:[%s2877_s2 + $0x48] sm:$0xff] }
 0x206   :  { %1524 = vrsqrt.f32 %v409_v36  ;;  %v728_v36 = vmul.f32 0.0051020407, %v2229_v21  ;;  %v1368_v21 = vld [vmem:[%s2876_s1 + $0x48] sm:$0xff] }
 0x207   :  { %v1507_v1 = vpop.eup %1506 }
 0x208   :  { %v99_v47 = vmul.f32 %v1507_v1, %v91_v10  ;;  %v96_v1 = vld [vmem:[%s2877_s2 + $0x10] sm:$0xff]  ;;  %v1348_v10 = vld [vmem:[%s2877_s2 + $0x28] sm:$0xff] }
 0x209   :  { %v1509_v41 = vpop.eup %1508 }
 0x20a   :  { %v100_v32 = vmul.f32 %v1509_v41, %v92_v34  ;;  %v97_v41 = vld [vmem:[%s2877_s2 + $0x18] sm:$0xff]  ;;  %v407_v34 = vadd.f32 1e-05, %v403_v37 }
 0x20c   :  { %v1511_v42 = vpop.eup %1510  ;;  %1526 = vrsqrt.f32 %v407_v34 }
 0x20d   :  { %v1513_v39 = vpop.eup %1512  ;;  %v101_v44 = vmul.f32 %v1511_v42, %v93_v15 }
 0x20e   :  { %v98_v35 = vmul.f32 %v1513_v39, %v90_v24  ;;  %v1515_v52 = vpop.eup %1514  ;;  %v1367_v39 = vld [vmem:[%s2876_s1 + $0x40] sm:$0xff] }
 0x20f   :  { %v261_v56 = vmul.f32 %v1515_v52, %v1343_v58  ;;  %v1517_v11 = vpop.eup %1516  ;;  %v1347_v58 = vld [vmem:[%s2877_s2 + $0x20] sm:$0xff] }
 0x210   :  { %109 = vperm.xlu1 %1504, %v99_v47   ;;  %v264_v62 = vmul.f32 %v1517_v11, %v1346_v55  ;;  %v565_v47 = vmul.f32 0.0051020407, %v2027_v20  ;;  %v1519_v8 = vpop.eup %1518  ;;  %v1344_v20 = vld [vmem:[%s2876_s1 + $0x28] sm:$0xff]  ;;  %v567_v55 = vmul.f32 0.0051020407, %v2031_v9 }
 0x211   :  { %v1521_v15 = vpop.eup %1520  ;;  %v262_v24 = vmul.f32 %v1519_v8, %v1344_v20  ;;  %v1394_v8 = vld [vmem:[%s2876_s1 + $0x78] sm:$0xff]  ;;  %v1371_v20 = vld [vmem:[%s2877_s2 + $0x40] sm:$0xff] }
 0x212   :  { %v569_v42 = vadd.f32 1e-05, %v565_v47  ;;  %v1523_v7 = vpop.eup %1522  ;;  %v571_v9 = vadd.f32 1e-05, %v567_v55  ;;  %v1420_v55 = vld [vmem:[%s2877_s2 + $0x88] sm:$0xff] }
 0x213   :  { %v1525_v40 = vpop.eup %1524 }
 0x214   :  { %114 = vperm.xlu1 %1504, %v100_v32   ;;  %v1350_v32 = vld [vmem:[%s2877_s2 + $0x38] sm:$0xff]  ;;  %1528 = vrsqrt.f32 %v569_v42  ;;  %v427_v52 = vmul.f32 %v1525_v40, %v1370_v63  ;;  %v1415_v40 = vld [vmem:[%s2876_s1 + $0x80] sm:$0xff] }
 0x215   :  { %1530 = vrsqrt.f32 %v408_v60  ;;  %v1373_v60 = vld [vmem:[%s2877_s2 + $0x50] sm:$0xff] }
 0x216   :  { %1532 = vrsqrt.f32 %v572_v25  ;;  %v1398_v25 = vld [vmem:[%s2877_s2 + $0x78] sm:$0xff] }
 0x218   :  { %119 = vperm.xlu1 %1504, %v101_v44   ;;  %v424_v44 = vmul.f32 %v1521_v15, %v1367_v39  ;;  %v729_v15 = vmul.f32 0.0051020407, %v2227_v18  ;;  %v1396_v39 = vld [vmem:[%s2877_s2 + $0x68] sm:$0xff] }
 0x219   :  { %104 = vperm.xlu0 %1505, %v98_v35   ;;  %v263_v35 = vmul.f32 %v1523_v7, %v1345_v0  ;;  %v730_v7 = vmul.f32 0.0051020407, %v2233_v59  ;;  %v1392_v18 = vld [vmem:[%s2876_s1 + $0x68] sm:$0xff] }
 0x21b   :  { %v734_v63 = vadd.f32 1e-05, %v730_v7 }
 0x21c   :  { %132 = vperm.xlu1 %1504, %v94_v48   ;;  %v566_v48 = vmul.f32 0.0051020407, %v2029_v14  ;;  %v1527_v14 = vpop.eup %1526 }
 0x21d   :  { %267 = vperm.xlu0 %1505, %v261_v56   ;;  %v1349_v56 = vld [vmem:[%s2877_s2 + $0x30] sm:$0xff]  ;;  %v425_v47 = vmul.f32 %v1527_v14, %v1368_v21  ;;  %v1422_v14 = vld [vmem:[%s2877_s2 + $0x98] sm:$0xff] }
 0x21e   :  { %v570_v11 = vadd.f32 1e-05, %v566_v48 }
 0x220   :  { %137 = vperm.xlu1 %1504, %v95_v46   ;;  %v1374_v46 = vld [vmem:[%s2877_s2 + $0x58] sm:$0xff]  ;;  %1534 = vrsqrt.f32 %v570_v11  ;;  %v1395_v11 = vld [vmem:[%s2877_s2 + $0x60] sm:$0xff] }
 0x221   :  { %282 = vperm.xlu0 %1505, %v264_v62   ;;  %v732_v62 = vadd.f32 1e-05, %v728_v36  ;;  %v1529_v37 = vpop.eup %1528 }
 0x223   :  { %1536 = vrsqrt.f32 %v732_v62 }
 0x224   :  { %142 = vperm.xlu1 %1504, %v96_v1   ;;  %v731_v1 = vmul.f32 0.0051020407, %v2231_v19  ;;  %v1369_v19 = vld [vmem:[%s2876_s1 + $0x50] sm:$0xff]  ;;  %1538 = vrsqrt.f32 %v571_v9 }
 0x225   :  { %300 = vperm.xlu0 %1505, %v1348_v10   ;;  %v1391_v10 = vld [vmem:[%s2876_s1 + $0x60] sm:$0xff] }
 0x226   :  { %v735_v34 = vadd.f32 1e-05, %v731_v1  ;;  %v587_v45 = vmul.f32 %v1529_v37, %v1391_v10  ;;  %v1416_v1 = vld [vmem:[%s2876_s1 + $0x88] sm:$0xff]  ;;  %v1417_v10 = vld [vmem:[%s2876_s1 + $0x90] sm:$0xff] }
 0x228   :  { %147 = vperm.xlu1 %1504, %v97_v41   ;;  %v1531_v41 = vpop.eup %1530  ;;  %1540 = vrsqrt.f32 %v735_v34 }
 0x229   :  { %310 = vperm.xlu0 %1505, %v1350_v32   ;;  %v1533_v32 = vpop.eup %1532  ;;  %v426_v42 = vmul.f32 %v1531_v41, %v1369_v19  ;;  %v1421_v41 = vld [vmem:[%s2877_s2 + $0x90] sm:$0xff] }
 0x22a   :  { %v590_v31 = vmul.f32 %v1533_v32, %v1394_v8 }
 0x22c   :  { %272 = vperm.xlu1 %1504, %v262_v24   ;;  %v733_v24 = vadd.f32 1e-05, %v729_v15 }
 0x22d   :  { %430 = vperm.xlu0 %1505, %v424_v44   ;;  %v1535_v44 = vpop.eup %1534 }
 0x22e   :  { %1542 = vrsqrt.f32 %v733_v24 }
 0x22f   :  { %1544 = vrsqrt.f32 %v734_v63 }
 0x230   :  { %277 = vperm.xlu1 %1504, %v263_v35   ;;  %v1537_v0 = vpop.eup %1536  ;;  %v588_v35 = vmul.f32 %v1535_v44, %v1392_v18 }
 0x231   :  { %445 = vperm.xlu0 %1505, %v427_v52   ;;  %v1539_v59 = vpop.eup %1538  ;;  %v750_v52 = vmul.f32 %v1537_v0, %v1415_v40 }
 0x234   :  { %295 = vperm.xlu1 %1504, %v1347_v58   ;;  %v1393_v58 = vld [vmem:[%s2876_s1 + $0x70] sm:$0xff] }
 0x235   :  { %463 = vperm.xlu0 %1505, %v1372_v57   ;;  %v1541_v48 = vpop.eup %1540  ;;  %v1418_v57 = vld [vmem:[%s2876_s1 + $0x98] sm:$0xff]  ;;  %v589_v36 = vmul.f32 %v1539_v59, %v1393_v58  ;;  %v1440_v59 = vld [vmem:[%s2876_s1 + $0xa8] sm:$0xff]  ;;  %v1439_v58 = vld [vmem:[%s2876_s1 + $0xa0] sm:$0xff] }
 0x238   :  { %305 = vperm.xlu1 %1504, %v1349_v56   ;;  %v753_v56 = vmul.f32 %v1541_v48, %v1418_v57 }
 0x239   :  { %473 = vperm.xlu0 %1505, %v1374_v46   ;;  %v1397_v46 = vld [vmem:[%s2877_s2 + $0x70] sm:$0xff] }
 0x23b   :  { %v1543_v62 = vpop.eup %1542 }
 0x23c   :  { %435 = vperm.xlu1 %1504, %v425_v47   ;;  %v751_v21 = vmul.f32 %v1543_v62, %v1416_v1  ;;  %v1545_v37 = vpop.eup %1544  ;;  %v1419_v47 = vld [vmem:[%s2877_s2 + $0x80] sm:$0xff] }
 0x23d   :  { %593 = vperm.xlu0 %1505, %v587_v45   ;;  %v752_v9 = vmul.f32 %v1545_v37, %v1417_v10  ;;  %v1441_v37 = vld [vmem:[%s2876_s1 + $0xb0] sm:$0xff] }
 0x240   :  { %440 = vperm.xlu1 %1504, %v426_v42  }
 0x241   :  { %608 = vperm.xlu0 %1505, %v590_v31  }
 0x244   :  { %458 = vperm.xlu1 %1504, %v1371_v20  }
 0x245   :  { %626 = vperm.xlu0 %1505, %v1396_v39  }
 0x248   :  { %468 = vperm.xlu1 %1504, %v1373_v60  }
 0x249   :  { %636 = vperm.xlu0 %1505, %v1398_v25  }
 0x24c   :  { %598 = vperm.xlu1 %1504, %v588_v35  }
 0x24d   :  { %756 = vperm.xlu0 %1505, %v750_v52  }
 0x250   :  { %603 = vperm.xlu1 %1504, %v589_v36  }
 0x251   :  { %771 = vperm.xlu0 %1505, %v753_v56  }
 0x254   :  { %621 = vperm.xlu1 %1504, %v1395_v11  }
 0x255   :  { %789 = vperm.xlu0 %1505, %v1420_v55  }
 0x258   :  { %631 = vperm.xlu1 %1504, %v1397_v46  }
 0x259   :  { %799 = vperm.xlu0 %1505, %v1422_v14  }
 0x25c   :  { %761 = vperm.xlu1 %1504, %v751_v21   ;;  %v1442_v21 = vld [vmem:[%s2876_s1 + $0xb8] sm:$0xff] }
 0x260   :  { %766 = vperm.xlu1 %1504, %v752_v9  }
 0x264   :  { %784 = vperm.xlu1 %1504, %v1419_v47  }
 0x268   :  { %794 = vperm.xlu1 %1504, %v1421_v41  }
 0x274   :  { %v882_v34 = vpop.xlane.xlu1 %881  ;;  %v878_v45 = vpop.xlane.xlu0 %877 }
 0x275   :  { %v892_v19 = vmul.f32 0.0051020407, %v882_v34  ;;  %v891_v32 = vmul.f32 0.0051020407, %v878_v45 }
 0x277   :  { %v896_v8 = vadd.f32 1e-05, %v892_v19  ;;  %v895_v42 = vadd.f32 1e-05, %v891_v32 }
 0x278   :  { %v890_v31 = vpop.xlane.xlu1 %889  ;;  %v886_v20 = vpop.xlane.xlu0 %885 }
 0x279   :  { %1546 = vrsqrt.f32 %v896_v8  ;;  %v894_v15 = vmul.f32 0.0051020407, %v890_v31  ;;  %v893_v39 = vmul.f32 0.0051020407, %v886_v20  ;;  %v1445_v20 = vld [vmem:[%s2877_s2 + $0xb0] sm:$0xff] }
 0x27a   :  { %1548 = vrsqrt.f32 %v895_v42 }
 0x27b   :  { %v898_v60 = vadd.f32 1e-05, %v894_v15  ;;  %v897_v24 = vadd.f32 1e-05, %v893_v39  ;;  %v1443_v15 = vld [vmem:[%s2877_s2 + $0xa0] sm:$0xff]  ;;  %v1464_v39 = vld [vmem:[%s2876_s1 + $0xc8] sm:$0xff] }
 0x27c   :  { %v1041_v7 = vpop.xlane.xlu0 %1040 }
 0x27d   :  { %1550 = vrsqrt.f32 %v898_v60  ;;  %v1045_v25 = vpop.xlane.xlu1 %1044  ;;  %v1054_v40 = vmul.f32 0.0051020407, %v1041_v7 }
 0x27e   :  { %1552 = vrsqrt.f32 %v897_v24  ;;  %v1055_v44 = vmul.f32 0.0051020407, %v1045_v25  ;;  %v1444_v25 = vld [vmem:[%s2877_s2 + $0xa8] sm:$0xff] }
 0x27f   :  { %v1058_v55 = vadd.f32 1e-05, %v1054_v40 }
 0x280   :  { %v1059_v18 = vadd.f32 1e-05, %v1055_v44  ;;  %v1049_v0 = vpop.xlane.xlu0 %1048 }
 0x281   :  { %v1056_v46 = vmul.f32 0.0051020407, %v1049_v0  ;;  %v1466_v0 = vld [vmem:[%s2876_s1 + $0xd8] sm:$0xff] }
 0x282   :  { %1554 = vrsqrt.f32 %v1059_v18 }
 0x283   :  { %v1060_v45 = vadd.f32 1e-05, %v1056_v46  ;;  %v1463_v46 = vld [vmem:[%s2876_s1 + $0xc0] sm:$0xff] }
 0x284   :  { %v1204_v63 = vpop.xlane.xlu1 %1203  ;;  %v1053_v35 = vpop.xlane.xlu0 %1052 }
 0x285   :  { %v1057_v52 = vmul.f32 0.0051020407, %v1053_v35  ;;  %v1217_v57 = vmul.f32 0.0051020407, %v1204_v63 }
 0x286   :  { %v1547_v48 = vpop.eup %1546 }
 0x287   :  { %v1549_v36 = vpop.eup %1548  ;;  %v1061_v56 = vadd.f32 1e-05, %v1057_v52  ;;  %v914_v11 = vmul.f32 %v1547_v48, %v1440_v59  ;;  %v1221_v9 = vadd.f32 1e-05, %v1217_v57 }
 0x288   :  { %v1212_v14 = vpop.xlane.xlu1 %1211  ;;  %v913_v62 = vmul.f32 %v1549_v36, %v1439_v58  ;;  %v1208_v1 = vpop.xlane.xlu0 %1207  ;;  %v1446_v58 = vld [vmem:[%s2877_s2 + $0xb8] sm:$0xff] }
 0x289   :  { %924 = vperm.xlu1 %1504, %v914_v11   ;;  %1556 = vrsqrt.f32 %v1061_v56  ;;  %v1219_v47 = vmul.f32 0.0051020407, %v1212_v14  ;;  %v1218_v24 = vmul.f32 0.0051020407, %v1208_v1 }
 0x28a   :  { %v1551_v10 = vpop.eup %1550  ;;  %919 = vperm.xlu0 %1505, %v913_v62   ;;  %1558 = vrsqrt.f32 %v1058_v55 }
 0x28b   :  { %v1553_v41 = vpop.eup %1552  ;;  %v916_v34 = vmul.f32 %v1551_v10, %v1442_v21  ;;  %1560 = vrsqrt.f32 %v1221_v9  ;;  %v1223_v8 = vadd.f32 1e-05, %v1219_v47  ;;  %v1222_v40 = vadd.f32 1e-05, %v1218_v24  ;;  %v1487_v10 = vld [vmem:[%s2876_s1 + $0xe0] sm:$0xff] }
 0x28c   :  { %v110_v19 = vpop.permute.xlu1 %109  ;;  %v915_v32 = vmul.f32 %v1553_v41, %v1441_v37  ;;  %v1216_v42 = vpop.xlane.xlu0 %1215  ;;  %1562 = vrsqrt.f32 %v1060_v45  ;;  %v1468_v37 = vld [vmem:[%s2877_s2 + $0xc8] sm:$0xff]  ;;  %v1465_v45 = vld [vmem:[%s2876_s1 + $0xd0] sm:$0xff] }
 0x28d   :  { %1564 = vrsqrt.f32 %v1223_v8  ;;  %v1220_v63 = vmul.f32 0.0051020407, %v1216_v42  ;;  %v125_v62 = vmul.f32 %v110_v19, %v1823_v4 }
 0x28e   :  { %934 = vperm.xlu0 %1505, %v916_v34   ;;  %929 = vperm.xlu1 %1504, %v915_v32   ;;  %1566 = vrsqrt.f32 %v1222_v40  ;;  %v2958_v40 = vld [vmem:[#allocation9_spill] sm:$0xff] }
 0x28f   :  { %v1555_v31 = vpop.eup %1554  ;;  %v1224_v14 = vadd.f32 1e-05, %v1220_v63 }
 0x290   :  { %v115_v60 = vpop.permute.xlu1 %114  ;;  %v1077_v7 = vmul.f32 %v1555_v31, %v1464_v39 }
 0x291   :  { %1568 = vrsqrt.f32 %v1224_v14  ;;  %v126_v8 = vmul.f32 %v115_v60, %v1806_v16  ;;  %v127_v42 = vmul.f32 %v115_v60, %v1809_v17 }
 0x292   :  { %957 = vperm.xlu0 %1505, %v1445_v20   ;;  %947 = vperm.xlu1 %1504, %v1443_v15   ;;  %v1489_v15 = vld [vmem:[%s2876_s1 + $0xf0] sm:$0xff] }
 0x294   :  { %v120_v44 = vpop.permute.xlu1 %119  ;;  %v105_v18 = vpop.permute.xlu0 %104 }
 0x295   :  { %v122_v59 = vmul.f32 %v105_v18, %v1800_v12  ;;  %v123_v52 = vmul.f32 %v105_v18, %v1803_v13  ;;  %v124_v13 = vmul.f32 %v110_v19, %v1820_v29  ;;  %v128_v60 = vmul.f32 %v120_v44, %v1827_v33 }
 0x296   :  { %1087 = vperm.xlu0 %1505, %v1077_v7   ;;  %952 = vperm.xlu1 %1504, %v1444_v25   ;;  %v1557_v35 = vpop.eup %1556  ;;  %v2957_v25 = vld [vmem:[#allocation2_spill] sm:$0xff] }
 0x297   :  { %v1079_v36 = vmul.f32 %v1557_v35, %v1466_v0  ;;  %v1559_v56 = vpop.eup %1558  ;;  %v129_v18 = vmul.f32 %v120_v44, %v2957_v25  ;;  %v2959_v35 = vld [vmem:[#allocation10_spill] sm:$0xff]  ;;  %v1494_v25 = vld [vmem:[%s2877_s2 + $0xf8] sm:$0xff] }
 0x298   :  { %v133_v48 = vpop.permute.xlu1 %132  ;;  %v2539_v57 = vpop.permute.xlu0 %267  ;;  %v1076_v41 = vmul.f32 %v1559_v56, %v1463_v46  ;;  %v1469_v46 = vld [vmem:[%s2877_s2 + $0xd0] sm:$0xff] }
 0x299   :  { %v150_v11 = vadd.f32 %v133_v48, %v122_v59  ;;  %v151_v55 = vadd.f32 %v133_v48, %v123_v52  ;;  %v1561_v12 = vpop.eup %1560  ;;  %v1467_v48 = vld [vmem:[%s2877_s2 + $0xc0] sm:$0xff] }
 0x29a   :  { %962 = vperm.xlu1 %1504, %v1446_v58   ;;  %1097 = vperm.xlu0 %1505, %v1079_v36   ;;  %v1563_v34 = vpop.eup %1562  ;;  %v1239_v19 = vmul.f32 %v1561_v12, %v1487_v10 }
 0x29b   :  { %v158_v1 = vmax.f32 %v150_v11, 0.0  ;;  %v159_v21 = vmax.f32 %v151_v55, 0.0  ;;  %v1565_v32 = vpop.eup %1564  ;;  %v1078_v7 = vmul.f32 %v1563_v34, %v1465_v45  ;;  %v2961_v34 = vld [vmem:[#allocation4_spill] sm:$0xff] }
 0x29c   :  { %v138_v9 = vpop.permute.xlu1 %137  ;;  %v283_v47 = vpop.permute.xlu0 %282  ;;  %v1241_v0 = vmul.f32 %v1565_v32, %v1489_v15 }
 0x29d   :  { %168 = vst [vmem:[%s2878_s3] sm:$0xff] %v158_v1  ;;  %169 = vst.msk [vmem:[%s2878_s3 + $0x8] sm:$0xff] %vm25_vm0, %v159_v21  ;;  %v152_v29 = vadd.f32 %v138_v9, %v124_v13  ;;  %v153_v4 = vadd.f32 %v138_v9, %v125_v62  ;;  %v291_v63 = vmul.f32 %v283_v47, %v2958_v40  ;;  %v1567_v14 = vpop.eup %1566  ;;  %v1470_v21 = vld [vmem:[%s2877_s2 + $0xd8] sm:$0xff] }
 0x29e   :  { %1082 = vperm.xlu1 %1504, %v1076_v41   ;;  %1115 = vperm.xlu0 %1505, %v1468_v37   ;;  %v292_v59 = vmul.f32 %v283_v47, %v2959_v35  ;;  %v1488_v37 = vld [vmem:[%s2876_s1 + $0xe8] sm:$0xff]  ;;  %v1569_v45 = vpop.eup %1568 }
 0x29f   :  { %v160_v31 = vmax.f32 %v152_v29, 0.0  ;;  %v161_v20 = vmax.f32 %v153_v4, 0.0  ;;  %v2960_v47 = vld [vmem:[#allocation3_spill] sm:$0xff]  ;;  %v1240_v4 = vmul.f32 %v1567_v14, %v1488_v37 }
 0x2a0   :  { %v143_v39 = vpop.permute.xlu1 %142  ;;  %v301_v24 = vpop.permute.xlu0 %300  ;;  %v2964_v35 = vld [vmem:[#allocation7_spill] sm:$0xff] }
 0x2a1   :  { %170 = vst [vmem:[%s2878_s3 + $0x10] sm:$0xff] %v160_v31  ;;  %171 = vst.msk [vmem:[%s2878_s3 + $0x18] sm:$0xff] %vm25_vm0, %v161_v20  ;;  %v154_v16 = vadd.f32 %v143_v39, %v126_v8  ;;  %v155_v17 = vadd.f32 %v143_v39, %v127_v42  ;;  %v1492_v8 = vld [vmem:[%s2877_s2 + $0xe8] sm:$0xff]  ;;  %v1490_v42 = vld [vmem:[%s2876_s1 + $0xf8] sm:$0xff] }
 0x2a2   :  { %1092 = vperm.xlu1 %1504, %v1078_v7   ;;  %1245 = vperm.xlu0 %1505, %v1239_v19   ;;  %v1242_v7 = vmul.f32 %v1569_v45, %v1490_v42  ;;  %v2969_v45 = vld [vmem:[#allocation12_spill] sm:$0xff] }
 0x2a3   :  { %v162_v52 = vmax.f32 %v154_v16, 0.0  ;;  %v163_v58 = vmax.f32 %v155_v17, 0.0  ;;  %v2962_v16 = vld [vmem:[#allocation5_spill] sm:$0xff] }
 0x2a4   :  { %v148_v36 = vpop.permute.xlu1 %147  ;;  %v311_v56 = vpop.permute.xlu0 %310  ;;  %v285_v17 = vmul.f32 %v2539_v57, %v2962_v16  ;;  %v2971_v16 = vld [vmem:[#allocation14_spill] sm:$0xff] }
 0x2a5   :  { %172 = vst [vmem:[%s2878_s3 + $0x20] sm:$0xff] %v162_v52  ;;  %173 = vst.msk [vmem:[%s2878_s3 + $0x28] sm:$0xff] %vm25_vm0, %v163_v58  ;;  %v156_v33 = vadd.f32 %v148_v36, %v128_v60  ;;  %v157_v44 = vadd.f32 %v148_v36, %v129_v18  ;;  %v319_v11 = vadd.f32 %v311_v56, %v291_v63  ;;  %v2963_v60 = vld [vmem:[#allocation6_spill] sm:$0xff]  ;;  %v2966_v58 = vld [vmem:[#allocation17_spill] sm:$0xff] }
 0x2a6   :  { %v320_v55 = vadd.f32 %v311_v56, %v292_v59  ;;  %1110 = vperm.xlu1 %1504, %v1467_v48   ;;  %1255 = vperm.xlu0 %1505, %v1241_v0   ;;  %v2967_v36 = vld [vmem:[#allocation18_spill] sm:$0xff] }
 0x2a7   :  { %v164_v12 = vmax.f32 %v156_v33, 0.0  ;;  %v165_v13 = vmax.f32 %v157_v44, 0.0  ;;  %v327_v62 = vmax.f32 %v319_v11, 0.0  ;;  %v1491_v11 = vld [vmem:[%s2877_s2 + $0xe0] sm:$0xff] }
 0x2a8   :  { %v328_v1 = vmax.f32 %v320_v55, 0.0  ;;  %v273_v10 = vpop.permute.xlu1 %272  ;;  %v2597_v9 = vpop.permute.xlu0 %430 }
 0x2a9   :  { %174 = vst [vmem:[%s2878_s3 + $0x30] sm:$0xff] %v164_v12  ;;  %175 = vst.msk [vmem:[%s2878_s3 + $0x38] sm:$0xff] %vm25_vm0, %v165_v13  ;;  %v287_v41 = vmul.f32 %v273_v10, %v2960_v47  ;;  %v288_v29 = vmul.f32 %v273_v10, %v2961_v34  ;;  %v1493_v47 = vld [vmem:[%s2877_s2 + $0xf0] sm:$0xff] }
 0x2aa   :  { %1357 = vst [vmem:[%s2878_s3 + $0x70] sm:$0xff] %v327_v62  ;;  %1358 = vst.msk [vmem:[%s2878_s3 + $0x78] sm:$0xff] %vm25_vm0, %v328_v1  ;;  %1120 = vperm.xlu1 %1504, %v1469_v46   ;;  %1125 = vperm.xlu0 %1505, %v1470_v21  }
 0x2ab   :  { %v315_v19 = vadd.f32 %v301_v24, %v287_v41  ;;  %v316_v32 = vadd.f32 %v301_v24, %v288_v29  ;;  %v286_v24 = vmul.f32 %v2539_v57, %v2963_v60  ;;  %v2965_v57 = vld [vmem:[#allocation8_spill] sm:$0xff]  ;;  %v2968_v29 = vld [vmem:[#allocation11_spill] sm:$0xff] }
 0x2ac   :  { %v278_v31 = vpop.permute.xlu1 %277  ;;  %v446_v20 = vpop.permute.xlu0 %445 }
 0x2ad   :  { %v323_v15 = vmax.f32 %v315_v19, 0.0  ;;  %v324_v39 = vmax.f32 %v316_v32, 0.0  ;;  %v289_v59 = vmul.f32 %v278_v31, %v2964_v35  ;;  %v290_v52 = vmul.f32 %v278_v31, %v2965_v57 }
 0x2ae   :  { %1278 = vperm.xlu0 %1505, %v1492_v8   ;;  %1250 = vperm.xlu1 %1504, %v1240_v4   ;;  %v454_v48 = vmul.f32 %v446_v20, %v2966_v58  ;;  %v455_v56 = vmul.f32 %v446_v20, %v2967_v36 }
 0x2af   :  { %1353 = vst [vmem:[%s2878_s3 + $0x50] sm:$0xff] %v323_v15  ;;  %1354 = vst.msk [vmem:[%s2878_s3 + $0x58] sm:$0xff] %vm25_vm0, %v324_v39  ;;  %v2970_v39 = vld [vmem:[#allocation13_spill] sm:$0xff] }
 0x2b0   :  { %v296_v18 = vpop.permute.xlu1 %295  ;;  %v464_v0 = vpop.permute.xlu0 %463 }
 0x2b1   :  { %v313_v40 = vadd.f32 %v296_v18, %v285_v17  ;;  %v314_v63 = vadd.f32 %v296_v18, %v286_v24  ;;  %v449_v17 = vmul.f32 %v2597_v9, %v2971_v16 }
 0x2b2   :  { %1288 = vperm.xlu0 %1505, %v1494_v25   ;;  %1260 = vperm.xlu1 %1504, %v1242_v7   ;;  %v448_v7 = vmul.f32 %v2597_v9, %v2970_v39  ;;  %v2975_v9 = vld [vmem:[#allocation26_spill] sm:$0xff] }
 0x2b3   :  { %v321_v33 = vmax.f32 %v313_v40, 0.0  ;;  %v322_v44 = vmax.f32 %v314_v63, 0.0  ;;  %v2973_v63 = vld [vmem:[#allocation16_spill] sm:$0xff] }
 0x2b4   :  { %v306_v55 = vpop.permute.xlu1 %305  ;;  %v474_v46 = vpop.permute.xlu0 %473 }
 0x2b5   :  { %1351 = vst [vmem:[%s2878_s3 + $0x40] sm:$0xff] %v321_v33  ;;  %1352 = vst.msk [vmem:[%s2878_s3 + $0x48] sm:$0xff] %vm25_vm0, %v322_v44  ;;  %v317_v14 = vadd.f32 %v306_v55, %v289_v59  ;;  %v318_v12 = vadd.f32 %v306_v55, %v290_v52  ;;  %v482_v13 = vadd.f32 %v474_v46, %v454_v48  ;;  %v2974_v59 = vld [vmem:[#allocation25_spill] sm:$0xff] }
 0x2b6   :  { %v483_v62 = vadd.f32 %v474_v46, %v455_v56  ;;  %1273 = vperm.xlu1 %1504, %v1491_v11  }
 0x2b7   :  { %v325_v1 = vmax.f32 %v317_v14, 0.0  ;;  %v326_v21 = vmax.f32 %v318_v12, 0.0  ;;  %v490_v37 = vmax.f32 %v482_v13, 0.0 }
 0x2b8   :  { %v491_v10 = vmax.f32 %v483_v62, 0.0  ;;  %v436_v41 = vpop.permute.xlu1 %435  ;;  %v594_v34 = vpop.permute.xlu0 %593 }
 0x2b9   :  { %1355 = vst [vmem:[%s2878_s3 + $0x60] sm:$0xff] %v325_v1  ;;  %1356 = vst.msk [vmem:[%s2878_s3 + $0x68] sm:$0xff] %vm25_vm0, %v326_v21  ;;  %v450_v4 = vmul.f32 %v436_v41, %v2968_v29  ;;  %v451_v19 = vmul.f32 %v436_v41, %v2969_v45  ;;  %v2976_v21 = vld [vmem:[#allocation19_spill] sm:$0xff] }
 0x2ba   :  { %1381 = vst [vmem:[%s2878_s3 + $0xb0] sm:$0xff] %v490_v37  ;;  %1382 = vst.msk [vmem:[%s2878_s3 + $0xb8] sm:$0xff] %vm25_vm0, %v491_v10  ;;  %1283 = vperm.xlu1 %1504, %v1493_v47   ;;  %v2977_v10 = vld [vmem:[#allocation20_spill] sm:$0xff] }
 0x2bb   :  { %v478_v32 = vadd.f32 %v464_v0, %v450_v4  ;;  %v479_v8 = vadd.f32 %v464_v0, %v451_v19  ;;  %v2972_v0 = vld [vmem:[#allocation15_spill] sm:$0xff] }
 0x2bc   :  { %v441_v42 = vpop.permute.xlu1 %440  ;;  %v609_v31 = vpop.permute.xlu0 %608 }
 0x2bd   :  { %v486_v20 = vmax.f32 %v478_v32, 0.0  ;;  %v487_v15 = vmax.f32 %v479_v8, 0.0  ;;  %v452_v40 = vmul.f32 %v441_v42, %v2972_v0  ;;  %v453_v35 = vmul.f32 %v441_v42, %v2973_v63  ;;  %v2978_v8 = vld [vmem:[#allocation21_spill] sm:$0xff] }
 0x2be   :  { %v617_v57 = vmul.f32 %v609_v31, %v2974_v59  ;;  %v618_v52 = vmul.f32 %v609_v31, %v2975_v9  ;;  %v611_v42 = vmul.f32 %v594_v34, %v2978_v8  ;;  %v2979_v31 = vld [vmem:[#allocation22_spill] sm:$0xff]  ;;  %v2988_v8 = vld [vmem:[#allocation31_spill] sm:$0xff] }
 0x2bf   :  { %1377 = vst [vmem:[%s2878_s3 + $0x90] sm:$0xff] %v486_v20  ;;  %1378 = vst.msk [vmem:[%s2878_s3 + $0x98] sm:$0xff] %vm25_vm0, %v487_v15  ;;  %v612_v20 = vmul.f32 %v594_v34, %v2979_v31  ;;  %v2983_v34 = vld [vmem:[#allocation34_spill] sm:$0xff]  ;;  %v2989_v31 = vld [vmem:[#allocation32_spill] sm:$0xff] }
 0x2c0   :  { %v459_v60 = vpop.permute.xlu1 %458  ;;  %v627_v24 = vpop.permute.xlu0 %626 }
 0x2c1   :  { %v476_v25 = vadd.f32 %v459_v60, %v448_v7  ;;  %v477_v18 = vadd.f32 %v459_v60, %v449_v17  ;;  %v2980_v17 = vld [vmem:[#allocation23_spill] sm:$0xff] }
 0x2c3   :  { %v484_v58 = vmax.f32 %v476_v25, 0.0  ;;  %v485_v48 = vmax.f32 %v477_v18, 0.0  ;;  %v2982_v18 = vld [vmem:[#allocation33_spill] sm:$0xff] }
 0x2c4   :  { %v469_v36 = vpop.permute.xlu1 %468  ;;  %v637_v56 = vpop.permute.xlu0 %636 }
 0x2c5   :  { %1375 = vst [vmem:[%s2878_s3 + $0x80] sm:$0xff] %v484_v58  ;;  %1376 = vst.msk [vmem:[%s2878_s3 + $0x88] sm:$0xff] %vm25_vm0, %v485_v48  ;;  %v480_v33 = vadd.f32 %v469_v36, %v452_v40  ;;  %v481_v44 = vadd.f32 %v469_v36, %v453_v35  ;;  %v645_v11 = vadd.f32 %v637_v56, %v617_v57 }
 0x2c6   :  { %v646_v55 = vadd.f32 %v637_v56, %v618_v52 }
 0x2c7   :  { %v488_v46 = vmax.f32 %v480_v33, 0.0  ;;  %v489_v14 = vmax.f32 %v481_v44, 0.0  ;;  %v653_v12 = vmax.f32 %v645_v11, 0.0 }
 0x2c8   :  { %v654_v13 = vmax.f32 %v646_v55, 0.0  ;;  %v599_v62 = vpop.permute.xlu1 %598  ;;  %v757_v1 = vpop.permute.xlu0 %756  ;;  %v2984_v55 = vld [vmem:[#allocation27_spill] sm:$0xff] }
 0x2c9   :  { %1379 = vst [vmem:[%s2878_s3 + $0xa0] sm:$0xff] %v488_v46  ;;  %1380 = vst.msk [vmem:[%s2878_s3 + $0xa8] sm:$0xff] %vm25_vm0, %v489_v14  ;;  %v613_v37 = vmul.f32 %v599_v62, %v2976_v21  ;;  %v614_v47 = vmul.f32 %v599_v62, %v2977_v10  ;;  %v2985_v14 = vld [vmem:[#allocation28_spill] sm:$0xff] }
 0x2ca   :  { %1405 = vst [vmem:[%s2878_s3 + $0xf0] sm:$0xff] %v653_v12  ;;  %1406 = vst.msk [vmem:[%s2878_s3 + $0xf8] sm:$0xff] %vm25_vm0, %v654_v13 }
 0x2cb   :  { %v641_v41 = vadd.f32 %v627_v24, %v613_v37  ;;  %v642_v29 = vadd.f32 %v627_v24, %v614_v47  ;;  %v2981_v24 = vld [vmem:[#allocation24_spill] sm:$0xff]  ;;  %v2986_v47 = vld [vmem:[#allocation29_spill] sm:$0xff] }
 0x2cc   :  { %v604_v4 = vpop.permute.xlu1 %603  ;;  %v772_v45 = vpop.permute.xlu0 %771 }
 0x2cd   :  { %v649_v19 = vmax.f32 %v641_v41, 0.0  ;;  %v650_v32 = vmax.f32 %v642_v29, 0.0  ;;  %v615_v60 = vmul.f32 %v604_v4, %v2980_v17  ;;  %v616_v25 = vmul.f32 %v604_v4, %v2981_v24  ;;  %v2987_v29 = vld [vmem:[#allocation30_spill] sm:$0xff] }
 0x2ce   :  { %v780_v0 = vmul.f32 %v772_v45, %v2982_v18  ;;  %v781_v40 = vmul.f32 %v772_v45, %v2983_v34  ;;  %v774_v41 = vmul.f32 %v757_v1, %v2986_v47  ;;  %v775_v4 = vmul.f32 %v757_v1, %v2987_v29  ;;  %v2990_v34 = vld [vmem:[#allocation35_spill] sm:$0xff]  ;;  %v2995_v47 = vld [vmem:[#allocation40_spill] sm:$0xff] }
 0x2cf   :  { %1401 = vst [vmem:[%s2878_s3 + $0xd0] sm:$0xff] %v649_v19  ;;  %1402 = vst.msk [vmem:[%s2878_s3 + $0xd8] sm:$0xff] %vm25_vm0, %v650_v32 }
 0x2d0   :  { %v622_v15 = vpop.permute.xlu1 %621  ;;  %v790_v39 = vpop.permute.xlu0 %789 }
 0x2d1   :  { %v639_v7 = vadd.f32 %v622_v15, %v611_v42  ;;  %v640_v16 = vadd.f32 %v622_v15, %v612_v20 }
 0x2d3   :  { %v647_v63 = vmax.f32 %v639_v7, 0.0  ;;  %v648_v35 = vmax.f32 %v640_v16, 0.0 }
 0x2d4   :  { %v632_v59 = vpop.permute.xlu1 %631  ;;  %v800_v57 = vpop.permute.xlu0 %799 }
 0x2d5   :  { %1399 = vst [vmem:[%s2878_s3 + $0xc0] sm:$0xff] %v647_v63  ;;  %1400 = vst.msk [vmem:[%s2878_s3 + $0xc8] sm:$0xff] %vm25_vm0, %v648_v35  ;;  %v643_v9 = vadd.f32 %v632_v59, %v615_v60  ;;  %v644_v52 = vadd.f32 %v632_v59, %v616_v25  ;;  %v808_v58 = vadd.f32 %v800_v57, %v780_v0  ;;  %v2991_v63 = vld [vmem:[#allocation36_spill] sm:$0xff] }
 0x2d6   :  { %v809_v48 = vadd.f32 %v800_v57, %v781_v40 }
 0x2d7   :  { %v651_v36 = vmax.f32 %v643_v9, 0.0  ;;  %v652_v56 = vmax.f32 %v644_v52, 0.0  ;;  %v816_v33 = vmax.f32 %v808_v58, 0.0 }
 0x2d8   :  { %v817_v44 = vmax.f32 %v809_v48, 0.0  ;;  %v762_v11 = vpop.permute.xlu1 %761 }
 0x2d9   :  { %1403 = vst [vmem:[%s2878_s3 + $0xe0] sm:$0xff] %v651_v36  ;;  %1404 = vst.msk [vmem:[%s2878_s3 + $0xe8] sm:$0xff] %vm25_vm0, %v652_v56  ;;  %v776_v46 = vmul.f32 %v762_v11, %v2984_v55  ;;  %v777_v12 = vmul.f32 %v762_v11, %v2985_v14  ;;  %v2993_v11 = vld [vmem:[#allocation38_spill] sm:$0xff] }
 0x2da   :  { %1429 = vst [vmem:[%s2878_s3 + $0x130] sm:$0xff] %v816_v33  ;;  %1430 = vst.msk [vmem:[%s2878_s3 + $0x138] sm:$0xff] %vm25_vm0, %v817_v44  ;;  %v2992_v33 = vld [vmem:[#allocation37_spill] sm:$0xff] }
 0x2db   :  { %v804_v13 = vadd.f32 %v790_v39, %v776_v46  ;;  %v805_v62 = vadd.f32 %v790_v39, %v777_v12 }
 0x2dc   :  { %v767_v21 = vpop.permute.xlu1 %766 }
 0x2dd   :  { %v812_v37 = vmax.f32 %v804_v13, 0.0  ;;  %v813_v10 = vmax.f32 %v805_v62, 0.0  ;;  %v778_v42 = vmul.f32 %v767_v21, %v2988_v8  ;;  %v779_v20 = vmul.f32 %v767_v21, %v2989_v31 }
 0x2df   :  { %1425 = vst [vmem:[%s2878_s3 + $0x110] sm:$0xff] %v812_v37  ;;  %1426 = vst.msk [vmem:[%s2878_s3 + $0x118] sm:$0xff] %vm25_vm0, %v813_v10  ;;  %v2994_v37 = vld [vmem:[#allocation39_spill] sm:$0xff] }
 0x2e0   :  { %v785_v45 = vpop.permute.xlu1 %784 }
 0x2e1   :  { %v802_v19 = vadd.f32 %v785_v45, %v774_v41  ;;  %v803_v32 = vadd.f32 %v785_v45, %v775_v4 }
 0x2e3   :  { %v810_v15 = vmax.f32 %v802_v19, 0.0  ;;  %v811_v39 = vmax.f32 %v803_v32, 0.0 }
 0x2e4   :  { %v795_v7 = vpop.permute.xlu1 %794 }
 0x2e5   :  { %1423 = vst [vmem:[%s2878_s3 + $0x100] sm:$0xff] %v810_v15  ;;  %1424 = vst.msk [vmem:[%s2878_s3 + $0x108] sm:$0xff] %vm25_vm0, %v811_v39  ;;  %v806_v1 = vadd.f32 %v795_v7, %v778_v42  ;;  %v807_v16 = vadd.f32 %v795_v7, %v779_v20 }
 0x2e7   :  { %v814_v17 = vmax.f32 %v806_v1, 0.0  ;;  %v815_v60 = vmax.f32 %v807_v16, 0.0 }
 0x2e9   :  { %1427 = vst [vmem:[%s2878_s3 + $0x120] sm:$0xff] %v814_v17  ;;  %1428 = vst.msk [vmem:[%s2878_s3 + $0x128] sm:$0xff] %vm25_vm0, %v815_v60 }
 0x304   :  { %v925_v24 = vpop.permute.xlu1 %924 }
 0x305   :  { %v920_v25 = vpop.permute.xlu0 %919  ;;  %v939_v44 = vmul.f32 %v925_v24, %v2992_v33  ;;  %v940_v55 = vmul.f32 %v925_v24, %v2993_v11 }
 0x306   :  { %v937_v40 = vmul.f32 %v920_v25, %v2990_v34  ;;  %v938_v35 = vmul.f32 %v920_v25, %v2991_v63 }
 0x309   :  { %v930_v18 = vpop.permute.xlu1 %929  ;;  %v935_v0 = vpop.permute.xlu0 %934 }
 0x30a   :  { %v941_v59 = vmul.f32 %v930_v18, %v2262_v51  ;;  %v942_v57 = vmul.f32 %v930_v18, %v2265_v54  ;;  %v943_v10 = vmul.f32 %v935_v0, %v2994_v37  ;;  %v944_v41 = vmul.f32 %v935_v0, %v2995_v47 }
 0x30d   :  { %v948_v9 = vpop.permute.xlu1 %947  ;;  %v958_v52 = vpop.permute.xlu0 %957 }
 0x30e   :  { %v965_v58 = vadd.f32 %v948_v9, %v937_v40  ;;  %v966_v48 = vadd.f32 %v948_v9, %v938_v35  ;;  %v969_v36 = vadd.f32 %v958_v52, %v941_v59  ;;  %v970_v56 = vadd.f32 %v958_v52, %v942_v57 }
 0x310   :  { %v973_v46 = vmax.f32 %v965_v58, 0.0  ;;  %v974_v14 = vmax.f32 %v966_v48, 0.0  ;;  %v977_v12 = vmax.f32 %v969_v36, 0.0  ;;  %v978_v13 = vmax.f32 %v970_v56, 0.0 }
 0x311   :  { %v953_v62 = vpop.permute.xlu1 %952  ;;  %v1088_v21 = vpop.permute.xlu0 %1087 }
 0x312   :  { %1447 = vst [vmem:[%s2878_s3 + $0x140] sm:$0xff] %v973_v46  ;;  %1448 = vst.msk [vmem:[%s2878_s3 + $0x148] sm:$0xff] %vm25_vm0, %v974_v14  ;;  %v967_v51 = vadd.f32 %v953_v62, %v939_v44  ;;  %v968_v54 = vadd.f32 %v953_v62, %v940_v55  ;;  %v1102_v42 = vmul.f32 %v1088_v21, %v2284_v30 }
 0x313   :  { %1451 = vst [vmem:[%s2878_s3 + $0x160] sm:$0xff] %v977_v12  ;;  %1452 = vst.msk [vmem:[%s2878_s3 + $0x168] sm:$0xff] %vm25_vm0, %v978_v13  ;;  %v1103_v31 = vmul.f32 %v1088_v21, %v2287_v3 }
 0x314   :  { %v975_v29 = vmax.f32 %v967_v51, 0.0  ;;  %v976_v4 = vmax.f32 %v968_v54, 0.0 }
 0x315   :  { %v963_v45 = vpop.permute.xlu1 %962  ;;  %v1098_v19 = vpop.permute.xlu0 %1097 }
 0x316   :  { %1449 = vst [vmem:[%s2878_s3 + $0x150] sm:$0xff] %v975_v29  ;;  %1450 = vst.msk [vmem:[%s2878_s3 + $0x158] sm:$0xff] %vm25_vm0, %v976_v4  ;;  %v971_v32 = vadd.f32 %v963_v45, %v943_v10  ;;  %v972_v8 = vadd.f32 %v963_v45, %v944_v41  ;;  %v1106_v63 = vmul.f32 %v1098_v19, %v2306_v28 }
 0x317   :  { %v1107_v35 = vmul.f32 %v1098_v19, %v2309_v27 }
 0x318   :  { %v979_v20 = vmax.f32 %v971_v32, 0.0  ;;  %v980_v15 = vmax.f32 %v972_v8, 0.0 }
 0x319   :  { %v1083_v39 = vpop.permute.xlu1 %1082  ;;  %v1116_v7 = vpop.permute.xlu0 %1115 }
 0x31a   :  { %1453 = vst [vmem:[%s2878_s3 + $0x170] sm:$0xff] %v979_v20  ;;  %1454 = vst.msk [vmem:[%s2878_s3 + $0x178] sm:$0xff] %vm25_vm0, %v980_v15  ;;  %v1130_v1 = vadd.f32 %v1116_v7, %v1102_v42  ;;  %v1131_v16 = vadd.f32 %v1116_v7, %v1103_v31  ;;  %v1100_v3 = vmul.f32 %v1083_v39, %v2278_v61 }
 0x31b   :  { %v1101_v25 = vmul.f32 %v1083_v39, %v2281_v2 }
 0x31c   :  { %v1138_v17 = vmax.f32 %v1130_v1, 0.0  ;;  %v1139_v60 = vmax.f32 %v1131_v16, 0.0 }
 0x31d   :  { %v1093_v30 = vpop.permute.xlu1 %1092  ;;  %v1246_v24 = vpop.permute.xlu0 %1245 }
 0x31e   :  { %1473 = vst [vmem:[%s2878_s3 + $0x190] sm:$0xff] %v1138_v17  ;;  %1474 = vst.msk [vmem:[%s2878_s3 + $0x198] sm:$0xff] %vm25_vm0, %v1139_v60  ;;  %v1104_v59 = vmul.f32 %v1093_v30, %v2300_v43  ;;  %v1105_v57 = vmul.f32 %v1093_v30, %v2303_v5  ;;  %v1263_v37 = vmul.f32 %v1246_v24, %v2322_v53 }
 0x31f   :  { %v1264_v10 = vmul.f32 %v1246_v24, %v2325_v38 }
 0x321   :  { %v1111_v18 = vpop.permute.xlu1 %1110  ;;  %v1256_v0 = vpop.permute.xlu0 %1255 }
 0x322   :  { %v1128_v34 = vadd.f32 %v1111_v18, %v1100_v3  ;;  %v1129_v40 = vadd.f32 %v1111_v18, %v1101_v25  ;;  %v1267_v53 = vmul.f32 %v1256_v0, %v2345_v26  ;;  %v1268_v38 = vmul.f32 %v1256_v0, %v2348_v50 }
 0x324   :  { %v1136_v9 = vmax.f32 %v1128_v34, 0.0  ;;  %v1137_v52 = vmax.f32 %v1129_v40, 0.0 }
 0x325   :  { %v1121_v58 = vpop.permute.xlu1 %1120  ;;  %v1126_v48 = vpop.permute.xlu0 %1125 }
 0x326   :  { %1471 = vst [vmem:[%s2878_s3 + $0x180] sm:$0xff] %v1136_v9  ;;  %1472 = vst.msk [vmem:[%s2878_s3 + $0x188] sm:$0xff] %vm25_vm0, %v1137_v52  ;;  %v1132_v61 = vadd.f32 %v1121_v58, %v1104_v59  ;;  %v1133_v2 = vadd.f32 %v1121_v58, %v1105_v57  ;;  %v1134_v28 = vadd.f32 %v1126_v48, %v1106_v63 }
 0x327   :  { %v1135_v27 = vadd.f32 %v1126_v48, %v1107_v35 }
 0x328   :  { %v1140_v43 = vmax.f32 %v1132_v61, 0.0  ;;  %v1141_v36 = vmax.f32 %v1133_v2, 0.0  ;;  %v1142_v5 = vmax.f32 %v1134_v28, 0.0 }
 0x329   :  { %v1143_v56 = vmax.f32 %v1135_v27, 0.0  ;;  %v1251_v33 = vpop.permute.xlu1 %1250  ;;  %v1279_v44 = vpop.permute.xlu0 %1278 }
 0x32a   :  { %1475 = vst [vmem:[%s2878_s3 + $0x1a0] sm:$0xff] %v1140_v43  ;;  %1476 = vst.msk [vmem:[%s2878_s3 + $0x1a8] sm:$0xff] %vm25_vm0, %v1141_v36  ;;  %v1265_v11 = vmul.f32 %v1251_v33, %v2328_v22  ;;  %v1266_v55 = vmul.f32 %v1251_v33, %v2331_v23 }
 0x32b   :  { %1477 = vst [vmem:[%s2878_s3 + $0x1b0] sm:$0xff] %v1142_v5  ;;  %1478 = vst.msk [vmem:[%s2878_s3 + $0x1b8] sm:$0xff] %vm25_vm0, %v1143_v56 }
 0x32c   :  { %v1293_v46 = vadd.f32 %v1279_v44, %v1265_v11  ;;  %v1294_v14 = vadd.f32 %v1279_v44, %v1266_v55 }
 0x32d   :  { %v1261_v12 = vpop.permute.xlu1 %1260  ;;  %v1289_v54 = vpop.permute.xlu0 %1288 }
 0x32e   :  { %v1301_v13 = vmax.f32 %v1293_v46, 0.0  ;;  %v1302_v62 = vmax.f32 %v1294_v14, 0.0  ;;  %v1269_v21 = vmul.f32 %v1261_v12, %v2351_v6  ;;  %v1270_v51 = vmul.f32 %v1261_v12, %v2354_v49 }
 0x330   :  { %1497 = vst [vmem:[%s2878_s3 + $0x1d0] sm:$0xff] %v1301_v13  ;;  %1498 = vst.msk [vmem:[%s2878_s3 + $0x1d8] sm:$0xff] %vm25_vm0, %v1302_v62  ;;  %v1297_v22 = vadd.f32 %v1289_v54, %v1269_v21  ;;  %v1298_v23 = vadd.f32 %v1289_v54, %v1270_v51 }
 0x331   :  { %v1274_v47 = vpop.permute.xlu1 %1273 }
 0x332   :  { %v1305_v6 = vmax.f32 %v1297_v22, 0.0  ;;  %v1306_v41 = vmax.f32 %v1298_v23, 0.0  ;;  %v1291_v49 = vadd.f32 %v1274_v47, %v1263_v37  ;;  %v1292_v29 = vadd.f32 %v1274_v47, %v1264_v10 }
 0x334   :  { %1501 = vst [vmem:[%s2878_s3 + $0x1f0] sm:$0xff] %v1305_v6  ;;  %1502 = vst.msk [vmem:[%s2878_s3 + $0x1f8] sm:$0xff] %vm25_vm0, %v1306_v41  ;;  %v1299_v4 = vmax.f32 %v1291_v49, 0.0  ;;  %v1300_v45 = vmax.f32 %v1292_v29, 0.0 }
 0x335   :  { %v1284_v19 = vpop.permute.xlu1 %1283 }
 0x336   :  { %1495 = vst [vmem:[%s2878_s3 + $0x1c0] sm:$0xff] %v1299_v4  ;;  %1496 = vst.msk [vmem:[%s2878_s3 + $0x1c8] sm:$0xff] %vm25_vm0, %v1300_v45  ;;  %v1295_v26 = vadd.f32 %v1284_v19, %v1267_v53  ;;  %v1296_v50 = vadd.f32 %v1284_v19, %v1268_v38 }
 0x338   :  { %v1303_v32 = vmax.f32 %v1295_v26, 0.0  ;;  %v1304_v8 = vmax.f32 %v1296_v50, 0.0 }
 0x33a   :  { %1499 = vst [vmem:[%s2878_s3 + $0x1e0] sm:$0xff] %v1303_v32  ;;  %1500 = vst.msk [vmem:[%s2878_s3 + $0x1e8] sm:$0xff] %vm25_vm0, %v1304_v8 }

</bundles_post_ra>
